<compile_context>
chip_gen: v7x
topology: tpu7x:2x2x1
jax: 0.10.0
libtpu: 0.0.40
codegen_flags: <defaults>
</compile_context>

<pallas_src>
import functools

import jax
import jax.numpy as jnp
from jax import lax
from jax.experimental import pallas as pl
from jax.experimental.pallas import tpu as pltpu

LN_EPS = 1e-5
HIDDEN = 64
FUSED = 2 * HIDDEN  # g and h networks fused side-by-side on 128 feature rows


def _round_up(x, m):
    return ((x + m - 1) // m) * m


# ---------------------------------------------------------------------------
# Fused math shared by the kernel and the matched JAX reference.
# Layout: features (g|h fused) on rows / sublanes, batch on columns / lanes.
# ---------------------------------------------------------------------------
def _ln_relu(h, lw, lb, mavg):
    """Per-half LayerNorm + ReLU on h: [128, M] f32. Stats via MXU (block-diag avg)."""
    mean = jnp.dot(mavg, h.astype(mavg.dtype), preferred_element_type=jnp.float32)
    c = h - mean
    var = jnp.dot(mavg, (c * c).astype(mavg.dtype), preferred_element_type=jnp.float32)
    y = c * lax.rsqrt(var + LN_EPS) * lw + lb
    return jnp.maximum(y, 0.0)


def _fused_tail_t(x_t, w1t, w2t, mavg, w3r, b1, lw1, lb1, b2, lw2, lb2):
    """x_t: [D, M] bf16 (batch on lanes). Returns proj [8, M] f32:
    row 0 = g-network output, row 1 = h-network output, rows 2..7 zero."""
    h = jnp.dot(w1t, x_t, preferred_element_type=jnp.float32) + b1          # [128, M]
    h = _ln_relu(h, lw1, lb1, mavg)
    h = jnp.dot(w2t, h.astype(w2t.dtype), preferred_element_type=jnp.float32) + b2
    h = _ln_relu(h, lw2, lb2, mavg)
    return jnp.dot(w3r, h.astype(w3r.dtype), preferred_element_type=jnp.float32)


# ---------------------------------------------------------------------------
# Pallas kernel
# ---------------------------------------------------------------------------
def disc_kernel(obs_t_ref, nobs_t_ref, dones_ref, logp_ref,
                w1t_ref, w2t_ref, mavg_ref, w3r_ref, vec_ref,
                out_ref, *, entropy_coef):
    w1t = w1t_ref[...]      # [128, D]   bf16 (fused layer-1, transposed)
    w2t = w2t_ref[...]      # [128, 128] bf16 (block-diagonal layer-2, transposed)
    mavg = mavg_ref[...]    # [128, 128] bf16 (block-diag ones/64 averaging matrix)
    w3r = w3r_ref[...]      # [8, 128]   bf16 (row0 = g w3, row1 = h w3)
    vec = vec_ref[...]      # [128, 8]   f32: b1, lw1, lb1, b2, lw2, lb2, pad, pad
    b1, lw1, lb1 = vec[:, 0:1], vec[:, 1:2], vec[:, 2:3]
    b2, lw2, lb2 = vec[:, 3:4], vec[:, 4:5], vec[:, 5:6]

    # Two traced passes (obs / next_obs) — no stacked copy is materialized.
    p_o = _fused_tail_t(obs_t_ref[...], w1t, w2t, mavg, w3r,
                        b1, lw1, lb1, b2, lw2, lb2)          # [8, TB]
    p_n = _fused_tail_t(nobs_t_ref[...], w1t, w2t, mavg, w3r,
                        b1, lw1, lb1, b2, lw2, lb2)          # [8, TB]

    r = p_o[0:1, :]        # g(obs)
    v_t = p_o[1:2, :]      # h(obs)
    v_tp1 = p_n[1:2, :]    # h(next_obs)   (g(next_obs) row is computed but unused)

    f = r + (1.0 - dones_ref[...]) * v_tp1 - v_t             # [1, TB], lane-dense
    out_ref[...] = f - entropy_coef * logp_ref[...]


# ---------------------------------------------------------------------------
# Parameter construction / fusion (plain-JAX glue, done once)
# ---------------------------------------------------------------------------
def _spectral_normalize(w):
    sigma = jnp.linalg.svd(w, compute_uv=False)[0]
    return w / sigma


def make_template_params(key, in_dim, hidden=HIDDEN):
    """Deterministic Template parameters. Linear weights stored [in, out]."""
    k1, k2, k3 = jax.random.split(key, 3)

    def lin(k, fan_in, fan_out):
        bound = 1.0 / jnp.sqrt(fan_in)
        kw, kb = jax.random.split(k)
        w = jax.random.uniform(kw, (fan_in, fan_out), jnp.float32, -bound, bound)
        b = jax.random.uniform(kb, (1, fan_out), jnp.float32, -bound, bound)
        return _spectral_normalize(w), b

    w1, b1 = lin(k1, in_dim, hidden)
    w2, b2 = lin(k2, hidden, hidden)
    bound = 1.0 / jnp.sqrt(hidden)
    w3 = _spectral_normalize(
        jax.random.uniform(k3, (hidden, 1), jnp.float32, -bound, bound))
    lw1 = jnp.ones((1, hidden), jnp.float32)
    lb1 = jnp.zeros((1, hidden), jnp.float32)
    lw2 = jnp.ones((1, hidden), jnp.float32)
    lb2 = jnp.zeros((1, hidden), jnp.float32)
    return (w1, b1, lw1, lb1, w2, b2, lw2, lb2, w3)


def fuse_gh_params(g_params, h_params, use_bf16=True):
    """Pack g and h into 5 resident slabs (transposed, feature-rows layout):
       W1T [128,D], W2T [128,128], Mavg [128,128], W3rows [8,128], vec [128,8]."""
    (gw1, gb1, glw1, glb1, gw2, gb2, glw2, glb2, gw3) = g_params
    (hw1, hb1, hlw1, hlb1, hw2, hb2, hlw2, hlb2, hw3) = h_params
    mat_dtype = jnp.bfloat16 if use_bf16 else jnp.float32

    # Layer 1, transposed and fused along output-feature rows (g rows 0..63, h rows 64..127).
    w1t = jnp.concatenate([gw1.T, hw1.T], axis=0).astype(mat_dtype)          # [128, D]

    # Layer 2, block-diagonal, transposed.
    z = jnp.zeros((HIDDEN, HIDDEN), jnp.float32)
    w2t = jnp.concatenate(
        [jnp.concatenate([gw2.T, z], axis=1),
         jnp.concatenate([z, hw2.T], axis=1)], axis=0).astype(mat_dtype)     # [128, 128]

    # Block-diagonal per-half averaging matrix for the MXU LayerNorm statistics.
    ones_blk = jnp.full((HIDDEN, HIDDEN), 1.0 / HIDDEN, jnp.float32)         # 1/64 exact in bf16
    mavg = jnp.concatenate(
        [jnp.concatenate([ones_blk, z], axis=1),
         jnp.concatenate([z, ones_blk], axis=1)], axis=0).astype(mat_dtype)  # [128, 128]

    # Output projection rows: row 0 = g's 64->1 weights, row 1 = h's, rest zero.
    w3r = jnp.zeros((8, FUSED), jnp.float32)
    w3r = w3r.at[0, :HIDDEN].set(gw3[:, 0]).at[1, HIDDEN:].set(hw3[:, 0])
    w3r = w3r.astype(mat_dtype)                                              # [8, 128]

    # Per-feature f32 vector slab: columns b1, lw1, lb1, b2, lw2, lb2, pad, pad.
    def cat(gv, hv):
        return jnp.concatenate([gv.reshape(-1), hv.reshape(-1)])             # [128]

    cols = [cat(gb1, hb1), cat(glw1, hlw1), cat(glb1, hlb1),
            cat(gb2, hb2), cat(glw2, hlw2), cat(glb2, hlb2),
            jnp.zeros((FUSED,), jnp.float32), jnp.zeros((FUSED,), jnp.float32)]
    vec = jnp.stack(cols, axis=1).astype(jnp.float32)                        # [128, 8]

    return w1t, w2t, mavg, w3r, vec


# ---------------------------------------------------------------------------
# Wrapper
# ---------------------------------------------------------------------------
def _choose_tiling(B, block_b):
    # Batch tiles live on the lane axis -> TB must be a multiple of 128.
    TB = max(128, _round_up(min(block_b, B), 128))
    Bp = _round_up(B, TB)
    # Guarantee >=2 grid steps when the tile is splittable so the "parallel"
    # batch axis shards across both v7x TensorCores (megacore).
    if Bp // TB < 2 and TB > 128:
        TB = _round_up((TB + 1) // 2, 128)
        Bp = _round_up(B, TB)
    return TB, Bp


def discriminator_forward(obs, dones, logp_pi, next_obs, fused_params,
                          *, entropy_coef=1.0, block_b=1024):
    B, D = obs.shape
    w1t, w2t, mavg, w3r, vec = fused_params
    TB, Bp = _choose_tiling(B, block_b)

    def pad_cols(x):
        return jnp.pad(x, ((0, 0), (0, Bp - B))) if Bp != B else x

    # Transposed/lane-dense presentation of the batch (layout plumbing, done in XLA).
    obs_t = pad_cols(obs.T.astype(w1t.dtype))                    # [D, Bp]  bf16
    nobs_t = pad_cols(next_obs.T.astype(w1t.dtype))              # [D, Bp]  bf16
    dones_r = pad_cols(dones.astype(jnp.float32).reshape(1, B))  # [1, Bp]  f32
    logp_r = pad_cols(logp_pi.astype(jnp.float32).reshape(1, B)) # [1, Bp]  f32

    kernel = functools.partial(disc_kernel, entropy_coef=float(entropy_coef))

    # Advisory cost estimate (matmul flops + rsqrt transcendentals + IO bytes).
    mm_flops_per_col = 2 * (FUSED * D) + 5 * 2 * (FUSED * FUSED) + 2 * (8 * FUSED)
    flops = 2 * Bp * mm_flops_per_col
    transcendentals = 2 * 2 * FUSED * Bp
    param_bytes = sum(int(p.size) * p.dtype.itemsize for p in (w1t, w2t, mavg, w3r, vec))
    bytes_accessed = (int(obs_t.size) + int(nobs_t.size)) * obs_t.dtype.itemsize \
        + (int(dones_r.size) + int(logp_r.size) + Bp) * 4 + param_bytes

    out = pl.pallas_call(
        kernel,
        out_shape=jax.ShapeDtypeStruct((1, Bp), jnp.float32),
        grid=(Bp // TB,),
        in_specs=[
            pl.BlockSpec((D, TB), lambda i: (0, i)),        # obs^T tile
            pl.BlockSpec((D, TB), lambda i: (0, i)),        # next_obs^T tile
            pl.BlockSpec((1, TB), lambda i: (0, i)),        # dones (lane-dense row)
            pl.BlockSpec((1, TB), lambda i: (0, i)),        # logp  (lane-dense row)
            pl.BlockSpec(w1t.shape, lambda i: (0, 0)),      # W1^T  (resident)
            pl.BlockSpec(w2t.shape, lambda i: (0, 0)),      # W2^T  (resident)
            pl.BlockSpec(mavg.shape, lambda i: (0, 0)),     # LN averaging matrix (resident)
            pl.BlockSpec(w3r.shape, lambda i: (0, 0)),      # projection rows (resident)
            pl.BlockSpec(vec.shape, lambda i: (0, 0)),      # bias/LN slab (resident)
        ],
        out_specs=pl.BlockSpec((1, TB), lambda i: (0, i)),  # lane-dense output row
        compiler_params=pltpu.CompilerParams(
            dimension_semantics=("parallel",),
            vmem_limit_bytes=32 * 1024 * 1024),             # fits v5e/v6e/v7x with headroom
        cost_estimate=pl.CostEstimate(flops=int(flops),
                                      transcendentals=int(transcendentals),
                                      bytes_accessed=int(bytes_accessed)),
    )(obs_t, nobs_t, dones_r, logp_r, w1t, w2t, mavg, w3r, vec)

    return out[0, :B].reshape(B, 1)


# ---------------------------------------------------------------------------
# References
# ---------------------------------------------------------------------------
def _template_fwd_f32(x, w1, b1, lw1, lb1, w2, b2, lw2, lb2, w3):
    h = jnp.dot(x, w1, preferred_element_type=jnp.float32) + b1
    mu = jnp.mean(h, axis=-1, keepdims=True)
    var = jnp.mean(jnp.square(h - mu), axis=-1, keepdims=True)
    h = (h - mu) * lax.rsqrt(var + LN_EPS) * lw1 + lb1
    h = jnp.maximum(h, 0.0)
    h = jnp.dot(h, w2, preferred_element_type=jnp.float32) + b2
    mu = jnp.mean(h, axis=-1, keepdims=True)
    var = jnp.mean(jnp.square(h - mu), axis=-1, keepdims=True)
    h = (h - mu) * lax.rsqrt(var + LN_EPS) * lw2 + lb2
    h = jnp.maximum(h, 0.0)
    return jnp.dot(h, w3, preferred_element_type=jnp.float32)


def _reference_forward_f32(obs, dones, logp_pi, next_obs, g_params, h_params,
                           entropy_coef=1.0):
    r = _template_fwd_f32(obs, *g_params)
    v_t = _template_fwd_f32(obs, *h_params)
    v_tp1 = _template_fwd_f32(next_obs, *h_params)
    return r + (1.0 - dones) * v_tp1 - v_t - entropy_coef * logp_pi


def _reference_forward_matched(obs, dones, logp_pi, next_obs, fused_params,
                               entropy_coef=1.0):
    """Same fused / transposed / bf16-operand math as the kernel, in plain JAX."""
    w1t, w2t, mavg, w3r, vec = fused_params
    b1, lw1, lb1 = vec[:, 0:1], vec[:, 1:2], vec[:, 2:3]
    b2, lw2, lb2 = vec[:, 3:4], vec[:, 4:5], vec[:, 5:6]
    p_o = _fused_tail_t(obs.T.astype(w1t.dtype), w1t, w2t, mavg, w3r,
                        b1, lw1, lb1, b2, lw2, lb2)
    p_n = _fused_tail_t(next_obs.T.astype(w1t.dtype), w1t, w2t, mavg, w3r,
                        b1, lw1, lb1, b2, lw2, lb2)
    r, v_t, v_tp1 = p_o[0:1, :], p_o[1:2, :], p_n[1:2, :]
    f = r + (1.0 - dones.reshape(1, -1)) * v_tp1 - v_t \
        - entropy_coef * logp_pi.reshape(1, -1)
    return f.reshape(-1, 1)


# ---------------------------------------------------------------------------
if __name__ == "__main__":
    B, OBS_DIM = 8, 16
    ENTROPY_COEF = 1.0

    key = jax.random.PRNGKey(0)
    kg, kh, ko, kn, kd, kl = jax.random.split(key, 6)

    g_params = make_template_params(kg, OBS_DIM)
    h_params = make_template_params(kh, OBS_DIM)
    fused_params = fuse_gh_params(g_params, h_params, use_bf16=True)

    obs = jax.random.normal(ko, (B, OBS_DIM), jnp.float32)
    next_obs = jax.random.normal(kn, (B, OBS_DIM), jnp.float32)
    dones = (jax.random.uniform(kd, (B, 1)) < 0.2).astype(jnp.float32)
    logp_pi = -jax.random.uniform(kl, (B, 1), jnp.float32)

    fwd = jax.jit(functools.partial(discriminator_forward,
                                    entropy_coef=ENTROPY_COEF))
    logits = jax.block_until_ready(fwd(obs, dones, logp_pi, next_obs, fused_params))
    assert logits.shape == (B, 1)

    # Tight check against a JAX reference with identical fused / bf16-operand math.
    ref_matched = _reference_forward_matched(obs, dones, logp_pi, next_obs,
                                             fused_params, ENTROPY_COEF)
    assert jnp.allclose(logits, ref_matched, atol=2e-3, rtol=2e-3)

    # Loose check vs the full-f32, unfused per-network reference: validates the g/h
    # fusion + MXU-LayerNorm algebra; slack only covers bf16 operand/stat rounding.
    ref_f32 = _reference_forward_f32(obs, dones, logp_pi, next_obs,
                                     g_params, h_params, ENTROPY_COEF)
    assert jnp.allclose(logits, ref_f32, atol=2e-1, rtol=2e-1)

    print("KERNEL_OK")
</pallas_src>

<mosaic_0001>
module attributes {stable_mosaic.version = 11 : i64} {
  func.func @disc_kernel(%arg0: i32, %arg1: memref<16x128xbf16, #tpu.memory_space<vmem>>, %arg2: memref<16x128xbf16, #tpu.memory_space<vmem>>, %arg3: memref<1x128xf32, #tpu.memory_space<vmem>>, %arg4: memref<1x128xf32, #tpu.memory_space<vmem>>, %arg5: memref<128x16xbf16, #tpu.memory_space<vmem>>, %arg6: memref<128x128xbf16, #tpu.memory_space<vmem>>, %arg7: memref<128x128xbf16, #tpu.memory_space<vmem>>, %arg8: memref<8x128xbf16, #tpu.memory_space<vmem>>, %arg9: memref<128x8xf32, #tpu.memory_space<vmem>>, %arg10: memref<1x128xf32, #tpu.memory_space<vmem>>) attributes {dimension_semantics = [#tpu.dimension_semantics<parallel>], iteration_bounds = array<i64: 1>, scalar_prefetch = 0 : i64, scratch_operands = 0 : i64, tpu.core_type = #tpu.core_type<tc>, window_params = [{transform_indices = @transform_0, window_bounds = array<i64: 16, 128>}, {transform_indices = @transform_1, window_bounds = array<i64: 16, 128>}, {transform_indices = @transform_2, window_bounds = array<i64: 1, 128>}, {transform_indices = @transform_3, window_bounds = array<i64: 1, 128>}, {pipeline_mode = #tpu.pipeline_mode<synchronous>, transform_indices = @transform_4, window_bounds = array<i64: 128, 16>}, {pipeline_mode = #tpu.pipeline_mode<synchronous>, transform_indices = @transform_5, window_bounds = array<i64: 128, 128>}, {pipeline_mode = #tpu.pipeline_mode<synchronous>, transform_indices = @transform_6, window_bounds = array<i64: 128, 128>}, {pipeline_mode = #tpu.pipeline_mode<synchronous>, transform_indices = @transform_7, window_bounds = array<i64: 8, 128>}, {pipeline_mode = #tpu.pipeline_mode<synchronous>, transform_indices = @transform_8, window_bounds = array<i64: 128, 8>}, {transform_indices = @transform_9, window_bounds = array<i64: 1, 128>}]} {
    %c0 = arith.constant 0 : index
    %c0_0 = arith.constant 0 : index
    %0 = vector.load %arg5[%c0, %c0_0] : memref<128x16xbf16, #tpu.memory_space<vmem>>, vector<128x16xbf16>
    %c0_1 = arith.constant 0 : index
    %c0_2 = arith.constant 0 : index
    %1 = vector.load %arg6[%c0_1, %c0_2] : memref<128x128xbf16, #tpu.memory_space<vmem>>, vector<128x128xbf16>
    %c0_3 = arith.constant 0 : index
    %c0_4 = arith.constant 0 : index
    %2 = vector.load %arg7[%c0_3, %c0_4] : memref<128x128xbf16, #tpu.memory_space<vmem>>, vector<128x128xbf16>
    %c0_5 = arith.constant 0 : index
    %c0_6 = arith.constant 0 : index
    %3 = vector.load %arg8[%c0_5, %c0_6] : memref<8x128xbf16, #tpu.memory_space<vmem>>, vector<8x128xbf16>
    %c0_7 = arith.constant 0 : index
    %c0_8 = arith.constant 0 : index
    %4 = vector.load %arg9[%c0_7, %c0_8] : memref<128x8xf32, #tpu.memory_space<vmem>>, vector<128x8xf32>
    %5 = vector.extract_strided_slice %4 {offsets = [0, 0], sizes = [128, 1], strides = [1, 1]} : vector<128x8xf32> to vector<128x1xf32>
    %6 = vector.extract_strided_slice %4 {offsets = [0, 1], sizes = [128, 1], strides = [1, 1]} : vector<128x8xf32> to vector<128x1xf32>
    %7 = vector.extract_strided_slice %4 {offsets = [0, 2], sizes = [128, 1], strides = [1, 1]} : vector<128x8xf32> to vector<128x1xf32>
    %8 = vector.extract_strided_slice %4 {offsets = [0, 3], sizes = [128, 1], strides = [1, 1]} : vector<128x8xf32> to vector<128x1xf32>
    %9 = vector.extract_strided_slice %4 {offsets = [0, 4], sizes = [128, 1], strides = [1, 1]} : vector<128x8xf32> to vector<128x1xf32>
    %10 = vector.extract_strided_slice %4 {offsets = [0, 5], sizes = [128, 1], strides = [1, 1]} : vector<128x8xf32> to vector<128x1xf32>
    %c0_9 = arith.constant 0 : index
    %c0_10 = arith.constant 0 : index
    %11 = vector.load %arg1[%c0_9, %c0_10] : memref<16x128xbf16, #tpu.memory_space<vmem>>, vector<16x128xbf16>
    %cst = arith.constant dense<0.000000e+00> : vector<128x128xf32>
    %12 = tpu.matmul %0, %11, %cst {dimension_numbers = #tpu.dot_dimension_numbers<[1], [0], [0], [1], [0, 0, 1, 1], [], []>} : vector<128x16xbf16>, vector<16x128xbf16>, vector<128x128xf32> -> vector<128x128xf32>
    %13 = vector.broadcast %5 : vector<128x1xf32> to vector<128x128xf32>
    %14 = arith.addf %12, %13 : vector<128x128xf32>
    %15 = arith.truncf %14 : vector<128x128xf32> to vector<128x128xbf16>
    %cst_11 = arith.constant dense<0.000000e+00> : vector<128x128xf32>
    %16 = tpu.matmul %2, %15, %cst_11 {dimension_numbers = #tpu.dot_dimension_numbers<[1], [0], [0], [1], [0, 0, 1, 1], [], []>} : vector<128x128xbf16>, vector<128x128xbf16>, vector<128x128xf32> -> vector<128x128xf32>
    %17 = arith.subf %14, %16 : vector<128x128xf32>
    %18 = arith.mulf %17, %17 : vector<128x128xf32>
    %19 = arith.truncf %18 : vector<128x128xf32> to vector<128x128xbf16>
    %cst_12 = arith.constant dense<0.000000e+00> : vector<128x128xf32>
    %20 = tpu.matmul %2, %19, %cst_12 {dimension_numbers = #tpu.dot_dimension_numbers<[1], [0], [0], [1], [0, 0, 1, 1], [], []>} : vector<128x128xbf16>, vector<128x128xbf16>, vector<128x128xf32> -> vector<128x128xf32>
    %cst_13 = arith.constant 9.99999974E-6 : f32
    %21 = vector.broadcast %cst_13 : f32 to vector<128x128xf32>
    %22 = arith.addf %20, %21 : vector<128x128xf32>
    %23 = math.rsqrt %22 : vector<128x128xf32>
    %24 = arith.mulf %17, %23 : vector<128x128xf32>
    %25 = vector.broadcast %6 : vector<128x1xf32> to vector<128x128xf32>
    %26 = arith.mulf %24, %25 : vector<128x128xf32>
    %27 = vector.broadcast %7 : vector<128x1xf32> to vector<128x128xf32>
    %28 = arith.addf %26, %27 : vector<128x128xf32>
    %cst_14 = arith.constant 0.000000e+00 : f32
    %29 = vector.broadcast %cst_14 : f32 to vector<128x128xf32>
    %30 = arith.maximumf %28, %29 : vector<128x128xf32>
    %31 = arith.truncf %30 : vector<128x128xf32> to vector<128x128xbf16>
    %cst_15 = arith.constant dense<0.000000e+00> : vector<128x128xf32>
    %32 = tpu.matmul %1, %31, %cst_15 {dimension_numbers = #tpu.dot_dimension_numbers<[1], [0], [0], [1], [0, 0, 1, 1], [], []>} : vector<128x128xbf16>, vector<128x128xbf16>, vector<128x128xf32> -> vector<128x128xf32>
    %33 = vector.broadcast %8 : vector<128x1xf32> to vector<128x128xf32>
    %34 = arith.addf %32, %33 : vector<128x128xf32>
    %35 = arith.truncf %34 : vector<128x128xf32> to vector<128x128xbf16>
    %cst_16 = arith.constant dense<0.000000e+00> : vector<128x128xf32>
    %36 = tpu.matmul %2, %35, %cst_16 {dimension_numbers = #tpu.dot_dimension_numbers<[1], [0], [0], [1], [0, 0, 1, 1], [], []>} : vector<128x128xbf16>, vector<128x128xbf16>, vector<128x128xf32> -> vector<128x128xf32>
    %37 = arith.subf %34, %36 : vector<128x128xf32>
    %38 = arith.mulf %37, %37 : vector<128x128xf32>
    %39 = arith.truncf %38 : vector<128x128xf32> to vector<128x128xbf16>
    %cst_17 = arith.constant dense<0.000000e+00> : vector<128x128xf32>
    %40 = tpu.matmul %2, %39, %cst_17 {dimension_numbers = #tpu.dot_dimension_numbers<[1], [0], [0], [1], [0, 0, 1, 1], [], []>} : vector<128x128xbf16>, vector<128x128xbf16>, vector<128x128xf32> -> vector<128x128xf32>
    %cst_18 = arith.constant 9.99999974E-6 : f32
    %41 = vector.broadcast %cst_18 : f32 to vector<128x128xf32>
    %42 = arith.addf %40, %41 : vector<128x128xf32>
    %43 = math.rsqrt %42 : vector<128x128xf32>
    %44 = arith.mulf %37, %43 : vector<128x128xf32>
    %45 = vector.broadcast %9 : vector<128x1xf32> to vector<128x128xf32>
    %46 = arith.mulf %44, %45 : vector<128x128xf32>
    %47 = vector.broadcast %10 : vector<128x1xf32> to vector<128x128xf32>
    %48 = arith.addf %46, %47 : vector<128x128xf32>
    %cst_19 = arith.constant 0.000000e+00 : f32
    %49 = vector.broadcast %cst_19 : f32 to vector<128x128xf32>
    %50 = arith.maximumf %48, %49 : vector<128x128xf32>
    %51 = arith.truncf %50 : vector<128x128xf32> to vector<128x128xbf16>
    %cst_20 = arith.constant dense<0.000000e+00> : vector<8x128xf32>
    %52 = tpu.matmul %3, %51, %cst_20 {dimension_numbers = #tpu.dot_dimension_numbers<[1], [0], [0], [1], [0, 0, 1, 1], [], []>} : vector<8x128xbf16>, vector<128x128xbf16>, vector<8x128xf32> -> vector<8x128xf32>
    %c0_21 = arith.constant 0 : index
    %c0_22 = arith.constant 0 : index
    %53 = vector.load %arg2[%c0_21, %c0_22] : memref<16x128xbf16, #tpu.memory_space<vmem>>, vector<16x128xbf16>
    %cst_23 = arith.constant dense<0.000000e+00> : vector<128x128xf32>
    %54 = tpu.matmul %0, %53, %cst_23 {dimension_numbers = #tpu.dot_dimension_numbers<[1], [0], [0], [1], [0, 0, 1, 1], [], []>} : vector<128x16xbf16>, vector<16x128xbf16>, vector<128x128xf32> -> vector<128x128xf32>
    %55 = vector.broadcast %5 : vector<128x1xf32> to vector<128x128xf32>
    %56 = arith.addf %54, %55 : vector<128x128xf32>
    %57 = arith.truncf %56 : vector<128x128xf32> to vector<128x128xbf16>
    %cst_24 = arith.constant dense<0.000000e+00> : vector<128x128xf32>
    %58 = tpu.matmul %2, %57, %cst_24 {dimension_numbers = #tpu.dot_dimension_numbers<[1], [0], [0], [1], [0, 0, 1, 1], [], []>} : vector<128x128xbf16>, vector<128x128xbf16>, vector<128x128xf32> -> vector<128x128xf32>
    %59 = arith.subf %56, %58 : vector<128x128xf32>
    %60 = arith.mulf %59, %59 : vector<128x128xf32>
    %61 = arith.truncf %60 : vector<128x128xf32> to vector<128x128xbf16>
    %cst_25 = arith.constant dense<0.000000e+00> : vector<128x128xf32>
    %62 = tpu.matmul %2, %61, %cst_25 {dimension_numbers = #tpu.dot_dimension_numbers<[1], [0], [0], [1], [0, 0, 1, 1], [], []>} : vector<128x128xbf16>, vector<128x128xbf16>, vector<128x128xf32> -> vector<128x128xf32>
    %cst_26 = arith.constant 9.99999974E-6 : f32
    %63 = vector.broadcast %cst_26 : f32 to vector<128x128xf32>
    %64 = arith.addf %62, %63 : vector<128x128xf32>
    %65 = math.rsqrt %64 : vector<128x128xf32>
    %66 = arith.mulf %59, %65 : vector<128x128xf32>
    %67 = vector.broadcast %6 : vector<128x1xf32> to vector<128x128xf32>
    %68 = arith.mulf %66, %67 : vector<128x128xf32>
    %69 = vector.broadcast %7 : vector<128x1xf32> to vector<128x128xf32>
    %70 = arith.addf %68, %69 : vector<128x128xf32>
    %cst_27 = arith.constant 0.000000e+00 : f32
    %71 = vector.broadcast %cst_27 : f32 to vector<128x128xf32>
    %72 = arith.maximumf %70, %71 : vector<128x128xf32>
    %73 = arith.truncf %72 : vector<128x128xf32> to vector<128x128xbf16>
    %cst_28 = arith.constant dense<0.000000e+00> : vector<128x128xf32>
    %74 = tpu.matmul %1, %73, %cst_28 {dimension_numbers = #tpu.dot_dimension_numbers<[1], [0], [0], [1], [0, 0, 1, 1], [], []>} : vector<128x128xbf16>, vector<128x128xbf16>, vector<128x128xf32> -> vector<128x128xf32>
    %75 = vector.broadcast %8 : vector<128x1xf32> to vector<128x128xf32>
    %76 = arith.addf %74, %75 : vector<128x128xf32>
    %77 = arith.truncf %76 : vector<128x128xf32> to vector<128x128xbf16>
    %cst_29 = arith.constant dense<0.000000e+00> : vector<128x128xf32>
    %78 = tpu.matmul %2, %77, %cst_29 {dimension_numbers = #tpu.dot_dimension_numbers<[1], [0], [0], [1], [0, 0, 1, 1], [], []>} : vector<128x128xbf16>, vector<128x128xbf16>, vector<128x128xf32> -> vector<128x128xf32>
    %79 = arith.subf %76, %78 : vector<128x128xf32>
    %80 = arith.mulf %79, %79 : vector<128x128xf32>
    %81 = arith.truncf %80 : vector<128x128xf32> to vector<128x128xbf16>
    %cst_30 = arith.constant dense<0.000000e+00> : vector<128x128xf32>
    %82 = tpu.matmul %2, %81, %cst_30 {dimension_numbers = #tpu.dot_dimension_numbers<[1], [0], [0], [1], [0, 0, 1, 1], [], []>} : vector<128x128xbf16>, vector<128x128xbf16>, vector<128x128xf32> -> vector<128x128xf32>
    %cst_31 = arith.constant 9.99999974E-6 : f32
    %83 = vector.broadcast %cst_31 : f32 to vector<128x128xf32>
    %84 = arith.addf %82, %83 : vector<128x128xf32>
    %85 = math.rsqrt %84 : vector<128x128xf32>
    %86 = arith.mulf %79, %85 : vector<128x128xf32>
    %87 = vector.broadcast %9 : vector<128x1xf32> to vector<128x128xf32>
    %88 = arith.mulf %86, %87 : vector<128x128xf32>
    %89 = vector.broadcast %10 : vector<128x1xf32> to vector<128x128xf32>
    %90 = arith.addf %88, %89 : vector<128x128xf32>
    %cst_32 = arith.constant 0.000000e+00 : f32
    %91 = vector.broadcast %cst_32 : f32 to vector<128x128xf32>
    %92 = arith.maximumf %90, %91 : vector<128x128xf32>
    %93 = arith.truncf %92 : vector<128x128xf32> to vector<128x128xbf16>
    %cst_33 = arith.constant dense<0.000000e+00> : vector<8x128xf32>
    %94 = tpu.matmul %3, %93, %cst_33 {dimension_numbers = #tpu.dot_dimension_numbers<[1], [0], [0], [1], [0, 0, 1, 1], [], []>} : vector<8x128xbf16>, vector<128x128xbf16>, vector<8x128xf32> -> vector<8x128xf32>
    %95 = vector.extract_strided_slice %52 {offsets = [0, 0], sizes = [1, 128], strides = [1, 1]} : vector<8x128xf32> to vector<1x128xf32>
    %96 = vector.extract_strided_slice %52 {offsets = [1, 0], sizes = [1, 128], strides = [1, 1]} : vector<8x128xf32> to vector<1x128xf32>
    %97 = vector.extract_strided_slice %94 {offsets = [1, 0], sizes = [1, 128], strides = [1, 1]} : vector<8x128xf32> to vector<1x128xf32>
    %c0_34 = arith.constant 0 : index
    %c0_35 = arith.constant 0 : index
    %98 = vector.load %arg3[%c0_34, %c0_35] : memref<1x128xf32, #tpu.memory_space<vmem>>, vector<1x128xf32>
    %cst_36 = arith.constant 1.000000e+00 : f32
    %99 = vector.broadcast %cst_36 : f32 to vector<1x128xf32>
    %100 = arith.subf %99, %98 : vector<1x128xf32>
    %101 = arith.mulf %100, %97 : vector<1x128xf32>
    %102 = arith.addf %95, %101 : vector<1x128xf32>
    %103 = arith.subf %102, %96 : vector<1x128xf32>
    %c0_37 = arith.constant 0 : index
    %c0_38 = arith.constant 0 : index
    %104 = vector.load %arg4[%c0_37, %c0_38] : memref<1x128xf32, #tpu.memory_space<vmem>>, vector<1x128xf32>
    %cst_39 = arith.constant 1.000000e+00 : f32
    %105 = vector.broadcast %cst_39 : f32 to vector<1x128xf32>
    %106 = arith.mulf %105, %104 : vector<1x128xf32>
    %107 = arith.subf %103, %106 : vector<1x128xf32>
    %c0_40 = arith.constant 0 : index
    %c0_41 = arith.constant 0 : index
    %108 = vector.load %arg10[%c0_40, %c0_41] : memref<1x128xf32, #tpu.memory_space<vmem>>, vector<1x128xf32>
    tpu.vector_store %arg10[%c0_40, %c0_41], %107 {strides = array<i32>} : memref<1x128xf32, #tpu.memory_space<vmem>>, vector<1x128xf32>,
    return
  }
  func.func @transform_0(%arg0: i32) -> (i32, i32) {
    %c0_i32 = arith.constant 0 : i32
    %c0_i32_0 = arith.constant 0 : i32
    return %c0_i32, %arg0 : i32, i32
  }
  func.func @transform_1(%arg0: i32) -> (i32, i32) {
    %c0_i32 = arith.constant 0 : i32
    %c0_i32_0 = arith.constant 0 : i32
    return %c0_i32, %arg0 : i32, i32
  }
  func.func @transform_2(%arg0: i32) -> (i32, i32) {
    %c0_i32 = arith.constant 0 : i32
    %c0_i32_0 = arith.constant 0 : i32
    return %c0_i32, %arg0 : i32, i32
  }
  func.func @transform_3(%arg0: i32) -> (i32, i32) {
    %c0_i32 = arith.constant 0 : i32
    %c0_i32_0 = arith.constant 0 : i32
    return %c0_i32, %arg0 : i32, i32
  }
  func.func @transform_4(%arg0: i32) -> (i32, i32) {
    %c0_i32 = arith.constant 0 : i32
    %c0_i32_0 = arith.constant 0 : i32
    %c0_i32_1 = arith.constant 0 : i32
    return %c0_i32, %c0_i32_0 : i32, i32
  }
  func.func @transform_5(%arg0: i32) -> (i32, i32) {
    %c0_i32 = arith.constant 0 : i32
    %c0_i32_0 = arith.constant 0 : i32
    %c0_i32_1 = arith.constant 0 : i32
    return %c0_i32, %c0_i32_0 : i32, i32
  }
  func.func @transform_6(%arg0: i32) -> (i32, i32) {
    %c0_i32 = arith.constant 0 : i32
    %c0_i32_0 = arith.constant 0 : i32
    %c0_i32_1 = arith.constant 0 : i32
    return %c0_i32, %c0_i32_0 : i32, i32
  }
  func.func @transform_7(%arg0: i32) -> (i32, i32) {
    %c0_i32 = arith.constant 0 : i32
    %c0_i32_0 = arith.constant 0 : i32
    %c0_i32_1 = arith.constant 0 : i32
    return %c0_i32, %c0_i32_0 : i32, i32
  }
  func.func @transform_8(%arg0: i32) -> (i32, i32) {
    %c0_i32 = arith.constant 0 : i32
    %c0_i32_0 = arith.constant 0 : i32
    %c0_i32_1 = arith.constant 0 : i32
    return %c0_i32, %c0_i32_0 : i32, i32
  }
  func.func @transform_9(%arg0: i32) -> (i32, i32) {
    %c0_i32 = arith.constant 0 : i32
    %c0_i32_0 = arith.constant 0 : i32
    return %c0_i32, %arg0 : i32, i32
  }
}

</mosaic_0001>

<bundles_post_ra>
// kernel: discriminator_forward.1
= control target key start
LH: loop header
LB: loop body
LE: loop exit
PB: predicated region body
PF: predicated region fallthrough
CT: control target
= control target key end

     0   :  { %vm226_vm0 = vcmask 130048   ;;  %v3382_v1 = vmov 0   ;;  %vm3389_vm1 = vmmov 0   ;;  %s4972_s0 = inlined_call_operand.vmem [shape: bf16[16,128], index: 0, kind: input, shape index: {}]   ;;  %s4973_s4 = inlined_call_operand.vmem [shape: bf16[128,16], index: 4, kind: input, shape index: {}]   ;;  %s4974_s8 = inlined_call_operand.vmem [shape: f32[128,8], index: 8, kind: input, shape index: {}]   ;;  %s4975_s6 = inlined_call_operand.vmem [shape: bf16[128,128], index: 6, kind: input, shape index: {}]   ;;  %s4976_s5 = inlined_call_operand.vmem [shape: bf16[128,128], index: 5, kind: input, shape index: {}]   ;;  %s4977_s1 = inlined_call_operand.vmem [shape: bf16[16,128], index: 1, kind: input, shape index: {}]   ;;  %s4978_s7 = inlined_call_operand.vmem [shape: bf16[8,128], index: 7, kind: input, shape index: {}]   ;;  %s4979_s2 = inlined_call_operand.vmem [shape: f32[1,128], index: 2, kind: input, shape index: {}]   ;;  %s4980_s3 = inlined_call_operand.vmem [shape: f32[1,128], index: 3, kind: input, shape index: {}]   ;;  %s4981_s9 = inlined_call_operand.vmem [shape: f32[1,128], index: 9, kind: output, shape index: {}]  }
   0x1   :  { %v3179_v0 = vld [vmem:[%s4972_s0] sm:$0xff]   ;;  %3138 = vset.pattern.permute.xlu0 %v3382_v1  ;;  %3139 = vset.pattern.permute.xlu1 %v3382_v1  ;;  %v3181_v3 = vld [vmem:[%s4973_s4 + $0x8] sm:$0xff]   ;;  %v3182_v4 = vld [vmem:[%s4973_s4 + $0x10] sm:$0xff]  }
   0x2   :  { %v3180_v2 = vld [vmem:[%s4973_s4] sm:$0xff]   ;;  %2733 = vmatprep.subr.bf16.mxu0 %v3179_v0  ;;  %v3464_v6 = vld [vmem:[%s4974_s8 + $0x10] sm:$0xff]  ;;  %v3183_v7 = vld [vmem:[%s4973_s4 + $0x18] sm:$0xff]  }
   0x3   :  { %2734 = vmatpush3.bf16.msra.mxu0 %v3179_v0  ;;  %2735 = vmatprep.mubr.msk.bf16.mxu0 %vm226_vm0, %v3180_v2  ;;  %v3459_v5 = vld [vmem:[%s4974_s8] sm:$0xff]  ;;  %v3477_v9 = vld [vmem:[%s4974_s8 + $0x8] sm:$0xff]  ;;  %v3482_v10 = vld [vmem:[%s4974_s8 + $0x18] sm:$0xff] }
   0x4   :  { %102 = vperm.xlu0 %3138, %v3459_v5   ;;  %112 = vperm.xlu1 %3139, %v3464_v6   ;;  %v3184_v8 = vld [vmem:[%s4973_s4 + $0x20] sm:$0xff]   ;;  %v3496_v12 = vld [vmem:[%s4974_s8 + $0x28] sm:$0xff]  ;;  %v3186_v14 = vld [vmem:[%s4973_s4 + $0x30] sm:$0xff]  }
   0x5   :  { %v3491_v11 = vld [vmem:[%s4974_s8 + $0x20] sm:$0xff]  ;;  %v3185_v13 = vld [vmem:[%s4973_s4 + $0x28] sm:$0xff]   ;;  %v3509_v15 = vld [vmem:[%s4974_s8 + $0x30] sm:$0xff] }
   0x6   :  { %2736 = vmatmul.mubr.msk.bf16.vlgmr.msra.gmra.mrb[0].mxu0 %vm226_vm0, %v3181_v3  ;;  %v3514_v16 = vld [vmem:[%s4974_s8 + $0x38] sm:$0xff]  ;;  %v3523_v17 = vld [vmem:[%s4974_s8 + $0x40] sm:$0xff]  ;;  %v3528_v18 = vld [vmem:[%s4974_s8 + $0x48] sm:$0xff] }
   0x7   :  { %2739 = vmatprep.mubr.msk.bf16.mxu0 %vm226_vm0, %v3182_v4  ;;  %v3187_v19 = vld [vmem:[%s4973_s4 + $0x38] sm:$0xff]   ;;  %v3538_v20 = vld [vmem:[%s4974_s8 + $0x50] sm:$0xff]  ;;  %v3551_v22 = vld [vmem:[%s4974_s8 + $0x60] sm:$0xff] }
   0x8   :  { %107 = vperm.xlu0 %3138, %v3477_v9   ;;  %117 = vperm.xlu1 %3139, %v3482_v10   ;;  %v3543_v21 = vld [vmem:[%s4974_s8 + $0x58] sm:$0xff]  ;;  %v3556_v23 = vld [vmem:[%s4974_s8 + $0x68] sm:$0xff]  ;;  %v3563_v24 = vld [vmem:[%s4974_s8 + $0x70] sm:$0xff] }
   0x9   :  { %v3568_v25 = vld [vmem:[%s4974_s8 + $0x78] sm:$0xff]  ;;  %v3575_v26 = vld [vmem:[%s4975_s6] sm:$0xff]  }
   0xa   :  { %2767 = vmatprep.mubr.bf16.mxu1 %v3575_v26 }
   0xc   :  { %122 = vperm.xlu0 %3138, %v3491_v11   ;;  %127 = vperm.xlu1 %3139, %v3496_v12  }
   0xe   :  { %2740 = vmatmul.mubr.msk.bf16.gmra.mrb[4].mxu0 %vm226_vm0, %v3183_v7 }
   0xf   :  { %2743 = vmatprep.mubr.msk.bf16.mxu0 %vm226_vm0, %v3184_v8 }
  0x10   :  { %132 = vperm.xlu0 %3138, %v3509_v15   ;;  %137 = vperm.xlu1 %3139, %v3514_v16  }
  0x14   :  { %142 = vperm.xlu0 %3138, %v3523_v17   ;;  %147 = vperm.xlu1 %3139, %v3528_v18  }
  0x16   :  { %2744 = vmatmul.mubr.msk.bf16.gmra.mrb[8].mxu0 %vm226_vm0, %v3185_v13 }
  0x17   :  { %2747 = vmatprep.mubr.msk.bf16.mxu0 %vm226_vm0, %v3186_v14 }
  0x18   :  { %152 = vperm.xlu0 %3138, %v3538_v20   ;;  %157 = vperm.xlu1 %3139, %v3543_v21  }
  0x1c   :  { %162 = vperm.xlu0 %3138, %v3551_v22   ;;  %167 = vperm.xlu1 %3139, %v3556_v23  }
  0x1e   :  { %2748 = vmatmul.mubr.msk.bf16.gmra.mrb[12].mxu0 %vm226_vm0, %v3187_v19 }
  0x1f   :  { %2799 = vmatprep.mubr.bf16.mxu0 %v3575_v26 }
  0x20   :  { %172 = vperm.xlu0 %3138, %v3563_v24   ;;  %177 = vperm.xlu1 %3139, %v3568_v25  }
  0x83   :  { %v3579_v27 = vpop.permute.xlu1 %112  ;;  %v3581_v28 = vpop.permute.xlu0 %102 }
  0x84   :  { %5063 = vst [vmem:[#allocation2_spill] sm:$0xff] %v3579_v27 }
  0x87   :  { %v3583_v29 = vpop.permute.xlu1 %117  ;;  %v3585_v30 = vpop.permute.xlu0 %107 }
  0x88   :  { %5064 = vst [vmem:[#allocation3_spill] sm:$0xff] %v3583_v29  ;;  %5065 = vst [vmem:[#allocation4_spill] sm:$0xff] %v3585_v30 }
  0x8b   :  { %v3587_v31 = vpop.permute.xlu1 %127  ;;  %v3589_v32 = vpop.permute.xlu0 %122 }
  0x8c   :  { %5066 = vst [vmem:[#allocation5_spill] sm:$0xff] %v3587_v31  ;;  %5067 = vst [vmem:[#allocation6_spill] sm:$0xff] %v3589_v32 }
  0x8f   :  { %v3591_v36 = vpop.permute.xlu1 %137  ;;  %v3602_v41 = vpop.permute.xlu0 %132 }
  0x90   :  { %5068 = vst [vmem:[#allocation7_spill] sm:$0xff] %v3591_v36  ;;  %5069 = vst [vmem:[#allocation8_spill] sm:$0xff] %v3602_v41 }
  0x93   :  { %v3611_v46 = vpop.permute.xlu1 %147  ;;  %v3613_v49 = vpop.permute.xlu0 %142 }
  0x94   :  { %5070 = vst [vmem:[#allocation9_spill] sm:$0xff] %v3611_v46  ;;  %5071 = vst [vmem:[#allocation10_spill] sm:$0xff] %v3613_v49 }
  0x97   :  { %v3629_v56 = vpop.permute.xlu1 %157  ;;  %v3633_v59 = vpop.permute.xlu0 %152 }
  0x98   :  { %5072 = vst [vmem:[#allocation11_spill] sm:$0xff] %v3629_v56  ;;  %5073 = vst [vmem:[#allocation12_spill] sm:$0xff] %v3633_v59 }
  0x9b   :  { %v3644_v2 = vpop.permute.xlu1 %167  ;;  %v3651_v7 = vpop.permute.xlu0 %162 }
  0x9c   :  { %5074 = vst [vmem:[#allocation13_spill] sm:$0xff] %v3644_v2  ;;  %5075 = vst [vmem:[#allocation14_spill] sm:$0xff] %v3651_v7 }
  0xd9   :  { %v2737_v33 = vpop.f32.mrb[0].mxu0 }
  0xda   :  { %v285_v34 = vpop.f32.mrb[1].mxu0  ;;  %v3605_v42 = vadd.f32 %v2737_v33, %v3579_v27  ;;  %v3655_v33 = vpop.permute.xlu1 %177 }
  0xdb   :  { %v2738_v35 = vpop.f32.mrb[2].mxu0  ;;  %v3594_v38 = vadd.f32 %v285_v34, %v3581_v28  ;;  %5076 = vst [vmem:[#allocation15_spill] sm:$0xff] %v3655_v33 }
  0xdc   :  { %v288_v37 = vpop.f32.mrb[3].mxu0  ;;  %v3597_v39 = vadd.f32 %v2738_v35, %v3583_v29 }
  0xdd   :  { %v3600_v40 = vadd.f32 %v288_v37, %v3585_v30 }
  0xde   :  { %v349_v44 = vpack.c.bf16 %v3597_v39, %v3605_v42 }
  0xdf   :  { %v348_v43 = vpack.c.bf16 %v3600_v40, %v3594_v38 }
  0xe1   :  { %v2741_v45 = vpop.f32.mrb[4].mxu0  ;;  %2751 = vmatprep.subr.bf16.mxu1 %v348_v43 }
  0xe2   :  { %v301_v47 = vpop.f32.mrb[5].mxu0  ;;  %2752 = vmatpush3.bf16.msra.mxu1 %v348_v43  ;;  %v3625_v54 = vadd.f32 %v2741_v45, %v3602_v41 }
  0xe3   :  { %v2742_v48 = vpop.f32.mrb[6].mxu0  ;;  %2753 = vmatprep.subr.bf16.mxu1 %v349_v44  ;;  %v3616_v51 = vadd.f32 %v301_v47, %v3589_v32 }
  0xe4   :  { %v304_v50 = vpop.f32.mrb[7].mxu0  ;;  %v3619_v52 = vadd.f32 %v2742_v48, %v3591_v36 }
  0xe5   :  { %v3622_v53 = vadd.f32 %v304_v50, %v3587_v31  ;;  %v3678_v50 = vld [vmem:[%s4975_s6 + $0x8] sm:$0xff]  }
  0xe6   :  { %2754 = vmatpush3.bf16.msra.mxu1 %v349_v44  ;;  %v351_v57 = vpack.c.bf16 %v3619_v52, %v3625_v54  ;;  %v3666_v44 = vpop.permute.xlu0 %172 }
  0xe7   :  { %v350_v55 = vpack.c.bf16 %v3622_v53, %v3616_v51  ;;  %5077 = vst [vmem:[#allocation16_spill] sm:$0xff] %v3666_v44 }
  0xe9   :  { %v2745_v58 = vpop.f32.mrb[8].mxu0  ;;  %2755 = vmatprep.subr.bf16.mxu1 %v350_v55 }
  0xea   :  { %v317_v60 = vpop.f32.mrb[9].mxu0  ;;  %2756 = vmatpush3.bf16.msra.mxu1 %v350_v55  ;;  %v3647_v3 = vadd.f32 %v2745_v58, %v3633_v59  ;;  %v3683_v55 = vld [vmem:[%s4975_s6 + $0x10] sm:$0xff]   ;;  %v3695_v58 = vld [vmem:[%s4975_s6 + $0x20] sm:$0xff]  }
  0xeb   :  { %v2746_v61 = vpop.f32.mrb[10].mxu0  ;;  %2757 = vmatprep.subr.bf16.mxu1 %v351_v57  ;;  %v3636_v63 = vadd.f32 %v317_v60, %v3613_v49  ;;  %v3702_v60 = vld [vmem:[%s4975_s6 + $0x28] sm:$0xff]  }
  0xec   :  { %v320_v62 = vpop.f32.mrb[11].mxu0  ;;  %v3639_v0 = vadd.f32 %v2746_v61, %v3629_v56  ;;  %v3707_v61 = vld [vmem:[%s4975_s6 + $0x30] sm:$0xff]  }
  0xed   :  { %v3642_v1 = vadd.f32 %v320_v62, %v3611_v46  ;;  %v3714_v62 = vld [vmem:[%s4975_s6 + $0x38] sm:$0xff]   ;;  %v5079_v46 = vmov 1  }
  0xee   :  { %2758 = vmatpush3.bf16.msra.mxu1 %v351_v57  ;;  %v353_v8 = vpack.c.bf16 %v3639_v0, %v3647_v3  ;;  %v3690_v57 = vld [vmem:[%s4975_s6 + $0x18] sm:$0xff]  }
  0xef   :  { %v352_v4 = vpack.c.bf16 %v3642_v1, %v3636_v63 }
  0xf1   :  { %v2749_v13 = vpop.f32.mrb[12].mxu0  ;;  %2759 = vmatprep.subr.bf16.mxu1 %v352_v4 }
  0xf2   :  { %v333_v14 = vpop.f32.mrb[13].mxu0  ;;  %2760 = vmatpush3.bf16.msra.mxu1 %v352_v4  ;;  %v3669_v45 = vadd.f32 %v2749_v13, %v3666_v44  ;;  %v4985_v4 = vmov 1  }
  0xf3   :  { %v2750_v19 = vpop.f32.mrb[14].mxu0  ;;  %2761 = vmatprep.subr.bf16.mxu1 %v353_v8  ;;  %v3658_v35 = vadd.f32 %v333_v14, %v3651_v7  ;;  %3141 = vset.pattern.permute.xlu1 %v4985_v4 }
  0xf4   :  { %v336_v34 = vpop.f32.mrb[15].mxu0  ;;  %v3661_v37 = vadd.f32 %v2750_v19, %v3655_v33  ;;  %3140 = vset.pattern.permute.xlu0 %v4985_v4  ;;  %675 = vperm.xlu1 %3141, %v3477_v9  }
  0xf5   :  { %v3664_v43 = vadd.f32 %v336_v34, %v3644_v2  ;;  %671 = vperm.xlu0 %3140, %v3459_v5   ;;  %v5078_v2 = vmov 2  }
  0xf6   :  { %2762 = vmatpush3.bf16.msra.mxu1 %v353_v8  ;;  %v355_v48 = vpack.c.bf16 %v3661_v37, %v3669_v45  ;;  %v4982_v8 = vmov 2  }
  0xf7   :  { %v354_v47 = vpack.c.bf16 %v3664_v43, %v3658_v35 }
  0xf8   :  { %3142 = vset.pattern.permute.xlu1 %v4982_v8 }
  0xf9   :  { %2763 = vmatprep.subr.bf16.mxu1 %v354_v47  ;;  %687 = vperm.xlu0 %3140, %v3491_v11  }
  0xfa   :  { %2764 = vmatpush3.bf16.msra.mxu1 %v354_v47  ;;  %751 = vperm.xlu1 %3142, %v3459_v5  }
  0xfb   :  { %2765 = vmatprep.subr.bf16.mxu1 %v355_v48 }
  0xfd   :  { %703 = vperm.xlu0 %3140, %v3523_v17  }
  0xfe   :  { %2766 = vmatpush3.bf16.msra.mxu1 %v355_v48  ;;  %3143 = vset.pattern.permute.xlu1 %v4985_v4 }
  0xff   :  { %679 = vperm.xlu1 %3143, %v3464_v6  }
 0x101   :  { %2768 = vmatmul.mubr.bf16.vlgmr.msra.gmra.mrb[0].mxu1 %v3678_v50  ;;  %719 = vperm.xlu0 %3140, %v3551_v22  }
 0x102   :  { %2771 = vmatprep.mubr.bf16.mxu1 %v3683_v55 }
 0x103   :  { %683 = vperm.xlu1 %3143, %v3482_v10  }
 0x105   :  { %3153 = vset.pattern.permute.xlu0 %v4982_v8 }
 0x106   :  { %755 = vperm.xlu0 %3153, %v3477_v9  }
 0x107   :  { %3144 = vset.pattern.permute.xlu1 %v4982_v8 }
 0x108   :  { %763 = vperm.xlu1 %3144, %v3482_v10  }
 0x109   :  { %2772 = vmatmul.mubr.bf16.gmra.mrb[4].mxu1 %v3690_v57 }
 0x10a   :  { %2775 = vmatprep.mubr.bf16.mxu1 %v3695_v58  ;;  %759 = vperm.xlu0 %3153, %v3464_v6  }
 0x10c   :  { %3145 = vset.pattern.permute.xlu1 %v4985_v4 }
 0x10d   :  { %691 = vperm.xlu1 %3145, %v3496_v12  }
 0x10e   :  { %771 = vperm.xlu0 %3153, %v3496_v12  }
 0x111   :  { %2776 = vmatmul.mubr.bf16.gmra.mrb[8].mxu1 %v3702_v60  ;;  %3146 = vset.pattern.permute.xlu1 %v4982_v8 }
 0x112   :  { %2779 = vmatprep.mubr.bf16.mxu1 %v3707_v61  ;;  %767 = vperm.xlu1 %3146, %v3491_v11  }
 0x113   :  { %775 = vperm.xlu0 %3153, %v3509_v15  }
 0x116   :  { %3147 = vset.pattern.permute.xlu1 %v4985_v4 }
 0x117   :  { %787 = vperm.xlu0 %3153, %v3528_v18   ;;  %695 = vperm.xlu1 %3147, %v3509_v15  }
 0x119   :  { %2780 = vmatmul.mubr.bf16.gmra.mrb[12].mxu1 %v3714_v62 }
 0x11b   :  { %791 = vperm.xlu0 %3153, %v3538_v20   ;;  %699 = vperm.xlu1 %3147, %v3514_v16  }
 0x11f   :  { %803 = vperm.xlu0 %3153, %v3556_v23   ;;  %3148 = vset.pattern.permute.xlu1 %v4982_v8 }
 0x120   :  { %779 = vperm.xlu1 %3148, %v3514_v16  }
 0x123   :  { %807 = vperm.xlu0 %3153, %v3563_v24  }
 0x124   :  { %3149 = vset.pattern.permute.xlu1 %v4985_v4 }
 0x125   :  { %707 = vperm.xlu1 %3149, %v3528_v18  }
 0x129   :  { %3150 = vset.pattern.permute.xlu1 %v4982_v8 }
 0x12a   :  { %783 = vperm.xlu1 %3150, %v3523_v17  }
 0x12e   :  { %3151 = vset.pattern.permute.xlu1 %v4985_v4 }
 0x12f   :  { %711 = vperm.xlu1 %3151, %v3538_v20  }
 0x133   :  { %715 = vperm.xlu1 %3151, %v3543_v21  }
 0x137   :  { %3152 = vset.pattern.permute.xlu1 %v5078_v2 }
 0x138   :  { %795 = vperm.xlu1 %3152, %v3543_v21  }
 0x13c   :  { %3154 = vset.pattern.permute.xlu1 %v5079_v46 }
 0x13d   :  { %723 = vperm.xlu1 %3154, %v3556_v23  }
 0x141   :  { %3155 = vset.pattern.permute.xlu1 %v5078_v2 }
 0x142   :  { %799 = vperm.xlu1 %3155, %v3551_v22  }
 0x146   :  { %3156 = vset.pattern.permute.xlu1 %v5079_v46 }
 0x147   :  { %727 = vperm.xlu1 %3156, %v3563_v24  }
 0x14b   :  { %731 = vperm.xlu1 %3156, %v3568_v25  }
 0x14f   :  { %3157 = vset.pattern.permute.xlu1 %v5078_v2  ;;  %v3196_v2 = vld [vmem:[%s4976_s5] sm:$0xff]  }
 0x150   :  { %811 = vperm.xlu1 %3157, %v3568_v25   ;;  %2831 = vmatprep.mubr.bf16.mxu1 %v3196_v2 }
 0x1d4   :  { %v2769_v13 = vpop.f32.mrb[0].mxu1 }
 0x1d5   :  { %v438_v14 = vpop.f32.mrb[1].mxu1  ;;  %v3763_v8 = vsub.f32 %v3605_v42, %v2769_v13 }
 0x1d6   :  { %v3756_v19 = vsub.f32 %v3594_v38, %v438_v14  ;;  %v2770_v34 = vpop.f32.mrb[2].mxu1 }
 0x1d7   :  { %v3760_v47 = vsub.f32 %v3597_v39, %v2770_v34  ;;  %v441_v48 = vpop.f32.mrb[3].mxu1  ;;  %v519_v39 = vmul.f32 %v3763_v8, %v3763_v8 }
 0x1d8   :  { %v3766_v44 = vsub.f32 %v3600_v40, %v441_v48  ;;  %v517_v4 = vmul.f32 %v3756_v19, %v3756_v19 }
 0x1d9   :  { %v520_v38 = vmul.f32 %v3760_v47, %v3760_v47 }
 0x1da   :  { %v518_v14 = vmul.f32 %v3766_v44, %v3766_v44 }
 0x1db   :  { %v534_v33 = vpack.c.bf16 %v520_v38, %v519_v39 }
 0x1dc   :  { %v2773_v42 = vpop.f32.mrb[4].mxu1  ;;  %v533_v13 = vpack.c.bf16 %v518_v14, %v517_v4 }
 0x1dd   :  { %v454_v40 = vpop.f32.mrb[5].mxu1  ;;  %v3786_v56 = vsub.f32 %v3625_v54, %v2773_v42 }
 0x1de   :  { %v3779_v34 = vsub.f32 %v3616_v51, %v454_v40  ;;  %v2774_v48 = vpop.f32.mrb[6].mxu1  ;;  %2783 = vmatprep.subr.bf16.mxu0 %v533_v13 }
 0x1df   :  { %v3782_v7 = vsub.f32 %v3619_v52, %v2774_v48  ;;  %v457_v59 = vpop.f32.mrb[7].mxu1  ;;  %2784 = vmatpush3.bf16.msra.mxu0 %v533_v13  ;;  %v523_v54 = vmul.f32 %v3786_v56, %v3786_v56 }
 0x1e0   :  { %v3789_v49 = vsub.f32 %v3622_v53, %v457_v59  ;;  %2785 = vmatprep.subr.bf16.mxu0 %v534_v33  ;;  %v521_v51 = vmul.f32 %v3779_v34, %v3779_v34 }
 0x1e1   :  { %v524_v52 = vmul.f32 %v3782_v7, %v3782_v7 }
 0x1e2   :  { %v522_v4 = vmul.f32 %v3789_v49, %v3789_v49 }
 0x1e3   :  { %2786 = vmatpush3.bf16.msra.mxu0 %v534_v33  ;;  %v536_v42 = vpack.c.bf16 %v524_v52, %v523_v54 }
 0x1e4   :  { %v2777_v38 = vpop.f32.mrb[8].mxu1  ;;  %v535_v14 = vpack.c.bf16 %v522_v4, %v521_v51 }
 0x1e5   :  { %v470_v53 = vpop.f32.mrb[9].mxu1  ;;  %v3809_v40 = vsub.f32 %v3647_v3, %v2777_v38 }
 0x1e6   :  { %v3803_v59 = vsub.f32 %v3636_v63, %v470_v53  ;;  %v2778_v39 = vpop.f32.mrb[10].mxu1  ;;  %2787 = vmatprep.subr.bf16.mxu0 %v535_v14 }
 0x1e7   :  { %v3806_v13 = vsub.f32 %v3639_v0, %v2778_v39  ;;  %v473_v33 = vpop.f32.mrb[11].mxu1  ;;  %2788 = vmatpush3.bf16.msra.mxu0 %v535_v14  ;;  %v527_v3 = vmul.f32 %v3809_v40, %v3809_v40 }
 0x1e8   :  { %v3812_v48 = vsub.f32 %v3642_v1, %v473_v33  ;;  %2789 = vmatprep.subr.bf16.mxu0 %v536_v42  ;;  %v525_v63 = vmul.f32 %v3803_v59, %v3803_v59 }
 0x1e9   :  { %v528_v51 = vmul.f32 %v3806_v13, %v3806_v13 }
 0x1ea   :  { %v526_v0 = vmul.f32 %v3812_v48, %v3812_v48 }
 0x1eb   :  { %2790 = vmatpush3.bf16.msra.mxu0 %v536_v42  ;;  %v538_v38 = vpack.c.bf16 %v528_v51, %v527_v3  ;;  %v3858_v51 = vpop.permute.xlu1 %675 }
 0x1ec   :  { %v2781_v1 = vpop.f32.mrb[12].mxu1  ;;  %v537_v52 = vpack.c.bf16 %v526_v0, %v525_v63  ;;  %5080 = vst [vmem:[#allocation17_spill] sm:$0xff] %v3858_v51 }
 0x1ed   :  { %v486_v4 = vpop.f32.mrb[13].mxu1  ;;  %v3832_v39 = vsub.f32 %v3669_v45, %v2781_v1 }
 0x1ee   :  { %v3825_v46 = vsub.f32 %v3658_v35, %v486_v4  ;;  %v2782_v54 = vpop.f32.mrb[14].mxu1  ;;  %2791 = vmatprep.subr.bf16.mxu0 %v537_v52  ;;  %v3385_v4 = vmov 3  }
 0x1ef   :  { %v3829_v14 = vsub.f32 %v3661_v37, %v2782_v54  ;;  %v489_v53 = vpop.f32.mrb[15].mxu1  ;;  %2792 = vmatpush3.bf16.msra.mxu0 %v537_v52  ;;  %v531_v37 = vmul.f32 %v3832_v39, %v3832_v39  ;;  %v3860_v0 = vpop.permute.xlu1 %751  ;;  %3159 = vset.pattern.permute.xlu1 %v3385_v4 }
 0x1f0   :  { %v3835_v42 = vsub.f32 %v3664_v43, %v489_v53  ;;  %2793 = vmatprep.subr.bf16.mxu0 %v538_v38  ;;  %v529_v35 = vmul.f32 %v3825_v46, %v3825_v46  ;;  %5081 = vst [vmem:[#allocation18_spill] sm:$0xff] %v3860_v0  ;;  %3158 = vset.pattern.permute.xlu0 %v3385_v4 }
 0x1f1   :  { %v532_v33 = vmul.f32 %v3829_v14, %v3829_v14  ;;  %859 = vperm.xlu1 %3159, %v3477_v9   ;;  %855 = vperm.xlu0 %3158, %v3459_v5   ;;  %v3884_v5 = vpop.permute.xlu0 %671 }
 0x1f2   :  { %v530_v63 = vmul.f32 %v3835_v42, %v3835_v42  ;;  %5087 = vst [vmem:[#allocation24_spill] sm:$0xff] %v3884_v5 }
 0x1f3   :  { %2794 = vmatpush3.bf16.msra.mxu0 %v538_v38  ;;  %v540_v45 = vpack.c.bf16 %v532_v33, %v531_v37  ;;  %v3862_v3 = vpop.permute.xlu1 %679 }
 0x1f4   :  { %v539_v43 = vpack.c.bf16 %v530_v63, %v529_v35 }
 0x1f5   :  { %863 = vperm.xlu1 %3159, %v3464_v6   ;;  %867 = vperm.xlu0 %3158, %v3482_v10   ;;  %v3890_v9 = vpop.permute.xlu0 %687 }
 0x1f6   :  { %2795 = vmatprep.subr.bf16.mxu0 %v539_v43  ;;  %5089 = vst [vmem:[#allocation26_spill] sm:$0xff] %v3890_v9 }
 0x1f7   :  { %2796 = vmatpush3.bf16.msra.mxu0 %v539_v43  ;;  %v3864_v1 = vpop.permute.xlu1 %683 }
 0x1f8   :  { %2797 = vmatprep.subr.bf16.mxu0 %v540_v45  ;;  %5082 = vst [vmem:[#allocation19_spill] sm:$0xff] %v3864_v1 }
 0x1f9   :  { %871 = vperm.xlu1 %3159, %v3491_v11   ;;  %875 = vperm.xlu0 %3158, %v3496_v12   ;;  %v3898_v11 = vpop.permute.xlu0 %703 }
 0x1fa   :  { %5091 = vst [vmem:[#allocation28_spill] sm:$0xff] %v3898_v11 }
 0x1fb   :  { %2798 = vmatpush3.bf16.msra.mxu0 %v540_v45  ;;  %v3866_v52 = vpop.permute.xlu1 %763 }
 0x1fc   :  { %5083 = vst [vmem:[#allocation20_spill] sm:$0xff] %v3866_v52 }
 0x1fd   :  { %879 = vperm.xlu1 %3159, %v3509_v15   ;;  %883 = vperm.xlu0 %3158, %v3514_v16   ;;  %v3902_v15 = vpop.permute.xlu0 %719 }
 0x1fe   :  { %2800 = vmatmul.mubr.bf16.vlgmr.msra.gmra.mrb[16].mxu0 %v3678_v50  ;;  %5093 = vst [vmem:[#allocation30_spill] sm:$0xff] %v3902_v15 }
 0x1ff   :  { %2803 = vmatprep.mubr.bf16.mxu0 %v3683_v55  ;;  %v3870_v54 = vpop.permute.xlu1 %691 }
 0x200   :  { %5084 = vst [vmem:[#allocation21_spill] sm:$0xff] %v3870_v54 }
 0x201   :  { %887 = vperm.xlu1 %3159, %v3523_v17   ;;  %891 = vperm.xlu0 %3158, %v3528_v18   ;;  %v3906_v17 = vpop.permute.xlu0 %755 }
 0x202   :  { %5095 = vst [vmem:[#allocation32_spill] sm:$0xff] %v3906_v17 }
 0x203   :  { %v3876_v38 = vpop.permute.xlu1 %767 }
 0x204   :  { %5085 = vst [vmem:[#allocation22_spill] sm:$0xff] %v3876_v38 }
 0x205   :  { %895 = vperm.xlu1 %3159, %v3538_v20   ;;  %899 = vperm.xlu0 %3158, %v3543_v21   ;;  %v3910_v33 = vpop.permute.xlu0 %759 }
 0x206   :  { %2804 = vmatmul.mubr.bf16.gmra.mrb[20].mxu0 %v3690_v57  ;;  %5097 = vst [vmem:[#allocation34_spill] sm:$0xff] %v3910_v33 }
 0x207   :  { %2807 = vmatprep.mubr.bf16.mxu0 %v3695_v58  ;;  %v3880_v53 = vpop.permute.xlu1 %695 }
 0x208   :  { %5086 = vst [vmem:[#allocation23_spill] sm:$0xff] %v3880_v53 }
 0x209   :  { %903 = vperm.xlu1 %3159, %v3551_v22   ;;  %907 = vperm.xlu0 %3158, %v3556_v23   ;;  %v3914_v4 = vpop.permute.xlu0 %771 }
 0x20a   :  { %5099 = vst [vmem:[#allocation36_spill] sm:$0xff] %v3914_v4 }
 0x20b   :  { %v3888_v6 = vpop.permute.xlu1 %699 }
 0x20c   :  { %5088 = vst [vmem:[#allocation25_spill] sm:$0xff] %v3888_v6 }
 0x20d   :  { %911 = vperm.xlu1 %3159, %v3563_v24   ;;  %915 = vperm.xlu0 %3158, %v3568_v25   ;;  %v3920_v32 = vpop.permute.xlu0 %775 }
 0x20e   :  { %2808 = vmatmul.mubr.bf16.gmra.mrb[24].mxu0 %v3702_v60  ;;  %5101 = vst [vmem:[#allocation38_spill] sm:$0xff] %v3920_v32 }
 0x20f   :  { %2811 = vmatprep.mubr.bf16.mxu0 %v3707_v61  ;;  %v3894_v10 = vpop.permute.xlu1 %779 }
 0x210   :  { %5090 = vst [vmem:[#allocation27_spill] sm:$0xff] %v3894_v10 }
 0x213   :  { %v3900_v12 = vpop.permute.xlu1 %707 }
 0x214   :  { %5092 = vst [vmem:[#allocation29_spill] sm:$0xff] %v3900_v12 }
 0x216   :  { %2812 = vmatmul.mubr.bf16.gmra.mrb[28].mxu0 %v3714_v62 }
 0x217   :  { %2863 = vmatprep.mubr.bf16.mxu0 %v3575_v26  ;;  %v3904_v16 = vpop.permute.xlu1 %783 }
 0x218   :  { %5094 = vst [vmem:[#allocation31_spill] sm:$0xff] %v3904_v16 }
 0x21b   :  { %v3908_v22 = vpop.permute.xlu1 %711 }
 0x21c   :  { %5096 = vst [vmem:[#allocation33_spill] sm:$0xff] %v3908_v22 }
 0x21f   :  { %v3912_v37 = vpop.permute.xlu1 %715 }
 0x220   :  { %5098 = vst [vmem:[#allocation35_spill] sm:$0xff] %v3912_v37 }
 0x2d1   :  { %v2801_v18 = vpop.f32.mrb[16].mxu0 }
 0x2d2   :  { %v584_v20 = vadd.f32 1e-05, %v2801_v18  ;;  %v575_v21 = vpop.f32.mrb[17].mxu0 }
 0x2d3   :  { %v576_v23 = vadd.f32 1e-05, %v575_v21  ;;  %v2802_v35 = vpop.f32.mrb[18].mxu0 }
 0x2d4   :  { %3205 = vrsqrt.f32 %v584_v20  ;;  %v587_v24 = vadd.f32 1e-05, %v2802_v35  ;;  %v578_v25 = vpop.f32.mrb[19].mxu0  ;;  %v3916_v35 = vpop.permute.xlu1 %795 }
 0x2d5   :  { %3207 = vrsqrt.f32 %v576_v23  ;;  %v579_v63 = vadd.f32 1e-05, %v578_v25  ;;  %5100 = vst [vmem:[#allocation37_spill] sm:$0xff] %v3916_v35 }
 0x2d6   :  { %3209 = vrsqrt.f32 %v587_v24 }
 0x2d7   :  { %3211 = vrsqrt.f32 %v579_v63 }
 0x2d9   :  { %v2805_v43 = vpop.f32.mrb[20].mxu0 }
 0x2da   :  { %v600_v45 = vadd.f32 1e-05, %v2805_v43  ;;  %v591_v2 = vpop.f32.mrb[21].mxu0 }
 0x2db   :  { %v592_v18 = vadd.f32 1e-05, %v591_v2  ;;  %v2806_v41 = vpop.f32.mrb[22].mxu0 }
 0x2dc   :  { %3213 = vrsqrt.f32 %v600_v45  ;;  %v603_v21 = vadd.f32 1e-05, %v2806_v41  ;;  %v594_v20 = vpop.f32.mrb[23].mxu0 }
 0x2dd   :  { %3215 = vrsqrt.f32 %v592_v18  ;;  %v595_v31 = vadd.f32 1e-05, %v594_v20  ;;  %v3924_v20 = vpop.permute.xlu1 %723 }
 0x2de   :  { %v3206_v23 = vpop.eup %3205  ;;  %3217 = vrsqrt.f32 %v603_v21  ;;  %5102 = vst [vmem:[#allocation39_spill] sm:$0xff] %v3924_v20 }
 0x2df   :  { %v3208_v24 = vpop.eup %3207  ;;  %3219 = vrsqrt.f32 %v595_v31  ;;  %v656_v25 = vmul.f32 %v3206_v23, %v3763_v8 }
 0x2e0   :  { %v3210_v63 = vpop.eup %3209  ;;  %v654_v43 = vmul.f32 %v3208_v24, %v3756_v19 }
 0x2e1   :  { %v3212_v36 = vpop.eup %3211  ;;  %v2809_v2 = vpop.f32.mrb[24].mxu0  ;;  %v657_v41 = vmul.f32 %v3210_v63, %v3760_v47  ;;  %v736_v45 = vmul.f32 %v3862_v3, %v656_v25 }
 0x2e2   :  { %v616_v27 = vadd.f32 1e-05, %v2809_v2  ;;  %v607_v18 = vpop.f32.mrb[25].mxu0  ;;  %v655_v21 = vmul.f32 %v3212_v36, %v3766_v44  ;;  %v734_v31 = vmul.f32 %v3884_v5, %v654_v43 }
 0x2e3   :  { %v608_v8 = vadd.f32 1e-05, %v607_v18  ;;  %v2810_v23 = vpop.f32.mrb[26].mxu0  ;;  %v737_v19 = vmul.f32 %v3864_v1, %v657_v41  ;;  %v816_v24 = vadd.f32 %v3910_v33, %v736_v45 }
 0x2e4   :  { %3221 = vrsqrt.f32 %v616_v27  ;;  %v619_v30 = vadd.f32 1e-05, %v2810_v23  ;;  %v610_v29 = vpop.f32.mrb[27].mxu0  ;;  %v735_v47 = vmul.f32 %v3858_v51, %v655_v21  ;;  %v814_v25 = vadd.f32 %v3860_v0, %v734_v31  ;;  %v3935_v23 = vpop.permute.xlu0 %787 }
 0x2e5   :  { %3223 = vrsqrt.f32 %v608_v8  ;;  %v611_v63 = vadd.f32 1e-05, %v610_v29  ;;  %v817_v2 = vadd.f32 %v3866_v52, %v737_v19  ;;  %v832_v41 = vmax.f32 %v816_v24, 0.0  ;;  %5103 = vst [vmem:[#allocation40_spill] sm:$0xff] %v3935_v23  ;;  %v3937_v31 = vpop.permute.xlu1 %799 }
 0x2e6   :  { %v3214_v36 = vpop.eup %3213  ;;  %3225 = vrsqrt.f32 %v619_v30  ;;  %v815_v44 = vadd.f32 %v3906_v17, %v735_v47  ;;  %v830_v21 = vmax.f32 %v814_v25, 0.0  ;;  %5104 = vst [vmem:[#allocation41_spill] sm:$0xff] %v3937_v31 }
 0x2e7   :  { %v3216_v43 = vpop.eup %3215  ;;  %3227 = vrsqrt.f32 %v611_v63  ;;  %v833_v18 = vmax.f32 %v817_v2, 0.0  ;;  %v660_v27 = vmul.f32 %v3214_v36, %v3786_v56 }
 0x2e8   :  { %v3218_v45 = vpop.eup %3217  ;;  %v831_v51 = vmax.f32 %v815_v44, 0.0  ;;  %v658_v29 = vmul.f32 %v3216_v43, %v3779_v34 }
 0x2e9   :  { %v3220_v8 = vpop.eup %3219  ;;  %v2813_v19 = vpop.f32.mrb[28].mxu0  ;;  %v847_v30 = vpack.c.bf16 %v833_v18, %v832_v41  ;;  %v661_v47 = vmul.f32 %v3218_v45, %v3782_v7  ;;  %v740_v63 = vmul.f32 %v3880_v53, %v660_v27 }
 0x2ea   :  { %v632_v24 = vadd.f32 1e-05, %v2813_v19  ;;  %v623_v2 = vpop.f32.mrb[29].mxu0  ;;  %v846_v17 = vpack.c.bf16 %v831_v51, %v830_v21  ;;  %v659_v56 = vmul.f32 %v3220_v8, %v3789_v49  ;;  %v738_v36 = vmul.f32 %v3890_v9, %v658_v29  ;;  %v3949_v45 = vpop.permute.xlu0 %791 }
 0x2eb   :  { %v624_v25 = vadd.f32 1e-05, %v623_v2  ;;  %v2814_v44 = vpop.f32.mrb[30].mxu0  ;;  %v741_v52 = vmul.f32 %v3888_v6, %v661_v47  ;;  %v820_v34 = vadd.f32 %v3920_v32, %v740_v63  ;;  %5105 = vst [vmem:[#allocation42_spill] sm:$0xff] %v3949_v45  ;;  %v3951_v21 = vpop.permute.xlu1 %727 }
 0x2ec   :  { %3229 = vrsqrt.f32 %v632_v24  ;;  %v635_v43 = vadd.f32 1e-05, %v2814_v44  ;;  %v626_v41 = vpop.f32.mrb[31].mxu0  ;;  %2815 = vmatprep.subr.bf16.mxu1 %v846_v17  ;;  %v739_v7 = vmul.f32 %v3870_v54, %v659_v56  ;;  %v818_v18 = vadd.f32 %v3876_v38, %v738_v36  ;;  %5106 = vst [vmem:[#allocation43_spill] sm:$0xff] %v3951_v21 }
 0x2ed   :  { %3231 = vrsqrt.f32 %v624_v25  ;;  %v627_v51 = vadd.f32 1e-05, %v626_v41  ;;  %2816 = vmatpush3.bf16.msra.mxu1 %v846_v17  ;;  %v821_v49 = vadd.f32 %v3894_v10, %v741_v52  ;;  %v836_v19 = vmax.f32 %v820_v34, 0.0 }
 0x2ee   :  { %v3222_v27 = vpop.eup %3221  ;;  %3233 = vrsqrt.f32 %v635_v43  ;;  %2817 = vmatprep.subr.bf16.mxu1 %v847_v30  ;;  %v819_v29 = vadd.f32 %v3914_v4, %v739_v7  ;;  %v834_v2 = vmax.f32 %v818_v18, 0.0  ;;  %v3962_v18 = vpop.permute.xlu0 %803 }
 0x2ef   :  { %v3224_v8 = vpop.eup %3223  ;;  %3235 = vrsqrt.f32 %v627_v51  ;;  %v837_v47 = vmax.f32 %v821_v49, 0.0  ;;  %v664_v63 = vmul.f32 %v3222_v27, %v3809_v40  ;;  %5107 = vst [vmem:[#allocation44_spill] sm:$0xff] %v3962_v18 }
 0x2f0   :  { %v3226_v24 = vpop.eup %3225  ;;  %v835_v17 = vmax.f32 %v819_v29, 0.0  ;;  %v662_v52 = vmul.f32 %v3224_v8, %v3803_v59  ;;  %v3964_v59 = vpop.permute.xlu1 %731 }
 0x2f1   :  { %v3228_v56 = vpop.eup %3227  ;;  %v665_v36 = vmul.f32 %v3226_v24, %v3806_v13  ;;  %2818 = vmatpush3.bf16.msra.mxu1 %v847_v30  ;;  %v849_v25 = vpack.c.bf16 %v837_v47, %v836_v19  ;;  %v744_v44 = vmul.f32 %v3908_v22, %v664_v63  ;;  %5108 = vst [vmem:[#allocation45_spill] sm:$0xff] %v3964_v59 }
 0x2f2   :  { %v848_v43 = vpack.c.bf16 %v835_v17, %v834_v2  ;;  %v663_v41 = vmul.f32 %v3228_v56, %v3812_v48  ;;  %v742_v34 = vmul.f32 %v3898_v11, %v662_v52 }
 0x2f3   :  { %v745_v7 = vmul.f32 %v3912_v37, %v665_v36  ;;  %v824_v40 = vadd.f32 %v3949_v45, %v744_v44  ;;  %v3974_v44 = vpop.permute.xlu0 %807 }
 0x2f4   :  { %2819 = vmatprep.subr.bf16.mxu1 %v848_v43  ;;  %v743_v13 = vmul.f32 %v3900_v12, %v663_v41  ;;  %v822_v30 = vadd.f32 %v3904_v16, %v742_v34  ;;  %5109 = vst [vmem:[#allocation46_spill] sm:$0xff] %v3974_v44  ;;  %v3977_v41 = vpop.permute.xlu1 %811 }
 0x2f5   :  { %v825_v51 = vadd.f32 %v3916_v35, %v745_v7  ;;  %2820 = vmatpush3.bf16.msra.mxu1 %v848_v43  ;;  %v840_v19 = vmax.f32 %v824_v40, 0.0  ;;  %5110 = vst [vmem:[#allocation47_spill] sm:$0xff] %v3977_v41 }
 0x2f6   :  { %v3230_v49 = vpop.eup %3229  ;;  %2821 = vmatprep.subr.bf16.mxu1 %v849_v25  ;;  %v823_v48 = vadd.f32 %v3935_v23, %v743_v13  ;;  %v838_v24 = vmax.f32 %v822_v30, 0.0 }
 0x2f7   :  { %v3232_v27 = vpop.eup %3231  ;;  %v841_v29 = vmax.f32 %v825_v51, 0.0  ;;  %v668_v8 = vmul.f32 %v3230_v49, %v3832_v39 }
 0x2f8   :  { %v3234_v47 = vpop.eup %3233  ;;  %v666_v63 = vmul.f32 %v3232_v27, %v3825_v46  ;;  %v839_v2 = vmax.f32 %v823_v48, 0.0 }
 0x2f9   :  { %v3236_v17 = vpop.eup %3235  ;;  %v748_v52 = vmul.f32 %v3951_v21, %v668_v8  ;;  %v669_v56 = vmul.f32 %v3234_v47, %v3829_v14  ;;  %2822 = vmatpush3.bf16.msra.mxu1 %v849_v25  ;;  %v851_v36 = vpack.c.bf16 %v841_v29, %v840_v19  ;;  %v3197_v29 = vld [vmem:[%s4976_s5 + $0x8] sm:$0xff]   ;;  %v3198_v8 = vld [vmem:[%s4976_s5 + $0x10] sm:$0xff]   ;;  %v3199_v19 = vld [vmem:[%s4976_s5 + $0x18] sm:$0xff]  }
 0x2fa   :  { %v746_v43 = vmul.f32 %v3902_v15, %v666_v63  ;;  %v850_v39 = vpack.c.bf16 %v839_v2, %v838_v24  ;;  %v667_v34 = vmul.f32 %v3236_v17, %v3835_v42  ;;  %v3200_v47 = vld [vmem:[%s4976_s5 + $0x20] sm:$0xff]   ;;  %v3201_v63 = vld [vmem:[%s4976_s5 + $0x28] sm:$0xff]   ;;  %v3202_v24 = vld [vmem:[%s4976_s5 + $0x30] sm:$0xff]   ;;  %v4008_v17 = vpop.permute.xlu0 %855 }
 0x2fb   :  { %v828_v46 = vadd.f32 %v3974_v44, %v748_v52  ;;  %v749_v7 = vmul.f32 %v3964_v59, %v669_v56  ;;  %v3203_v2 = vld [vmem:[%s4976_s5 + $0x38] sm:$0xff]   ;;  %5111 = vst [vmem:[#allocation48_spill] sm:$0xff] %v4008_v17  ;;  %v4010_v52 = vpop.permute.xlu1 %859 }
 0x2fc   :  { %v826_v40 = vadd.f32 %v3937_v31, %v746_v43  ;;  %2823 = vmatprep.subr.bf16.mxu1 %v850_v39  ;;  %v747_v14 = vmul.f32 %v3924_v20, %v667_v34  ;;  %5112 = vst [vmem:[#allocation49_spill] sm:$0xff] %v4010_v52 }
 0x2fd   :  { %v829_v25 = vadd.f32 %v3977_v41, %v749_v7  ;;  %2824 = vmatpush3.bf16.msra.mxu1 %v850_v39  ;;  %v844_v30 = vmax.f32 %v828_v46, 0.0 }
 0x2fe   :  { %2825 = vmatprep.subr.bf16.mxu1 %v851_v36  ;;  %v827_v13 = vadd.f32 %v3962_v18, %v747_v14  ;;  %v842_v49 = vmax.f32 %v826_v40, 0.0  ;;  %v4012_v56 = vpop.permute.xlu0 %867 }
 0x2ff   :  { %v845_v51 = vmax.f32 %v829_v25, 0.0  ;;  %5113 = vst [vmem:[#allocation50_spill] sm:$0xff] %v4012_v56 }
 0x300   :  { %v843_v48 = vmax.f32 %v827_v13, 0.0 }
 0x301   :  { %2826 = vmatpush3.bf16.msra.mxu1 %v851_v36  ;;  %v853_v42 = vpack.c.bf16 %v845_v51, %v844_v30  ;;  %v4014_v36 = vpop.permute.xlu1 %863 }
 0x302   :  { %v852_v27 = vpack.c.bf16 %v843_v48, %v842_v49  ;;  %5114 = vst [vmem:[#allocation51_spill] sm:$0xff] %v4014_v36  ;;  %v4016_v43 = vpop.permute.xlu0 %875 }
 0x303   :  { %5115 = vst [vmem:[#allocation52_spill] sm:$0xff] %v4016_v43 }
 0x304   :  { %2827 = vmatprep.subr.bf16.mxu1 %v852_v27 }
 0x305   :  { %2828 = vmatpush3.bf16.msra.mxu1 %v852_v27  ;;  %v4018_v39 = vpop.permute.xlu1 %871 }
 0x306   :  { %2829 = vmatprep.subr.bf16.mxu1 %v853_v42  ;;  %5116 = vst [vmem:[#allocation53_spill] sm:$0xff] %v4018_v39  ;;  %v4020_v40 = vpop.permute.xlu0 %883 }
 0x307   :  { %5117 = vst [vmem:[#allocation54_spill] sm:$0xff] %v4020_v40 }
 0x309   :  { %2830 = vmatpush3.bf16.msra.mxu1 %v853_v42  ;;  %v4031_v30 = vpop.permute.xlu1 %879 }
 0x30a   :  { %5118 = vst [vmem:[#allocation55_spill] sm:$0xff] %v4031_v30  ;;  %v4040_v27 = vpop.permute.xlu0 %891 }
 0x30b   :  { %5119 = vst [vmem:[#allocation56_spill] sm:$0xff] %v4040_v27 }
 0x30c   :  { %2832 = vmatmul.mubr.bf16.vlgmr.msra.gmra.mrb[16].mxu1 %v3197_v29 }
 0x30d   :  { %2835 = vmatprep.mubr.bf16.mxu1 %v3198_v8 }
 0x314   :  { %2836 = vmatmul.mubr.bf16.gmra.mrb[20].mxu1 %v3199_v19  ;;  %v4042_v19 = vpop.permute.xlu1 %887 }
 0x315   :  { %2839 = vmatprep.mubr.bf16.mxu1 %v3200_v47  ;;  %5120 = vst [vmem:[#allocation57_spill] sm:$0xff] %v4042_v19 }
 0x31c   :  { %2840 = vmatmul.mubr.bf16.gmra.mrb[24].mxu1 %v3201_v63 }
 0x31d   :  { %2843 = vmatprep.mubr.bf16.mxu1 %v3202_v24 }
 0x324   :  { %2844 = vmatmul.mubr.bf16.gmra.mrb[28].mxu1 %v3203_v2 }
 0x325   :  { %2895 = vmatprep.mubr.bf16.mxu1 %v3575_v26 }
 0x3df   :  { %v2833_v34 = vpop.f32.mrb[16].mxu1 }
 0x3e0   :  { %v1000_v46 = vpop.f32.mrb[17].mxu1  ;;  %v4034_v51 = vadd.f32 %v2833_v34, %v4014_v36 }
 0x3e1   :  { %v2834_v7 = vpop.f32.mrb[18].mxu1  ;;  %v4023_v26 = vadd.f32 %v1000_v46, %v4008_v17 }
 0x3e2   :  { %v1003_v14 = vpop.f32.mrb[19].mxu1  ;;  %v4026_v25 = vadd.f32 %v2834_v7, %v4012_v56  ;;  %v4058_v7 = vpop.permute.xlu0 %899 }
 0x3e3   :  { %v4029_v13 = vadd.f32 %v1003_v14, %v4010_v52  ;;  %5121 = vst [vmem:[#allocation58_spill] sm:$0xff] %v4058_v7 }
 0x3e4   :  { %v1064_v48 = vpack.c.bf16 %v4026_v25, %v4034_v51 }
 0x3e5   :  { %v1063_v49 = vpack.c.bf16 %v4029_v13, %v4023_v26 }
 0x3e7   :  { %v2837_v42 = vpop.f32.mrb[20].mxu1  ;;  %2847 = vmatprep.subr.bf16.mxu0 %v1063_v49 }
 0x3e8   :  { %v1016_v29 = vpop.f32.mrb[21].mxu1  ;;  %2848 = vmatpush3.bf16.msra.mxu0 %v1063_v49  ;;  %v4054_v34 = vadd.f32 %v2837_v42, %v4031_v30 }
 0x3e9   :  { %v2838_v8 = vpop.f32.mrb[22].mxu1  ;;  %2849 = vmatprep.subr.bf16.mxu0 %v1064_v48  ;;  %v4045_v63 = vadd.f32 %v1016_v29, %v4018_v39  ;;  %v4062_v29 = vpop.permute.xlu1 %895 }
 0x3ea   :  { %v1019_v47 = vpop.f32.mrb[23].mxu1  ;;  %v4048_v24 = vadd.f32 %v2838_v8, %v4020_v40  ;;  %5122 = vst [vmem:[#allocation59_spill] sm:$0xff] %v4062_v29  ;;  %v4073_v40 = vpop.permute.xlu0 %907 }
 0x3eb   :  { %v4051_v2 = vadd.f32 %v1019_v47, %v4016_v43  ;;  %5123 = vst [vmem:[#allocation60_spill] sm:$0xff] %v4073_v40 }
 0x3ec   :  { %2850 = vmatpush3.bf16.msra.mxu0 %v1064_v48  ;;  %v1066_v14 = vpack.c.bf16 %v4048_v24, %v4054_v34 }
 0x3ed   :  { %v1065_v46 = vpack.c.bf16 %v4051_v2, %v4045_v63  ;;  %v4080_v36 = vpop.permute.xlu1 %903 }
 0x3ee   :  { %5124 = vst [vmem:[#allocation61_spill] sm:$0xff] %v4080_v36 }
 0x3ef   :  { %v2841_v49 = vpop.f32.mrb[24].mxu1  ;;  %2851 = vmatprep.subr.bf16.mxu0 %v1065_v46 }
 0x3f0   :  { %v1032_v8 = vpop.f32.mrb[25].mxu1  ;;  %2852 = vmatpush3.bf16.msra.mxu0 %v1065_v46  ;;  %v4076_v39 = vadd.f32 %v2841_v49, %v4062_v29 }
 0x3f1   :  { %v2842_v47 = vpop.f32.mrb[26].mxu1  ;;  %2853 = vmatprep.subr.bf16.mxu0 %v1066_v14  ;;  %v4065_v42 = vadd.f32 %v1032_v8, %v4042_v19  ;;  %v4095_v52 = vpop.permute.xlu1 %911 }
 0x3f2   :  { %v1035_v48 = vpop.f32.mrb[27].mxu1  ;;  %v4068_v30 = vadd.f32 %v2842_v47, %v4058_v7  ;;  %5126 = vst [vmem:[#allocation63_spill] sm:$0xff] %v4095_v52 }
 0x3f3   :  { %v4071_v43 = vadd.f32 %v1035_v48, %v4040_v27  ;;  %v4084_v27 = vpop.permute.xlu0 %915 }
 0x3f4   :  { %2854 = vmatpush3.bf16.msra.mxu0 %v1066_v14  ;;  %v1068_v8 = vpack.c.bf16 %v4068_v30, %v4076_v39  ;;  %5125 = vst [vmem:[#allocation62_spill] sm:$0xff] %v4084_v27 }
 0x3f5   :  { %v1067_v46 = vpack.c.bf16 %v4071_v43, %v4065_v42 }
 0x3f7   :  { %v2845_v19 = vpop.f32.mrb[28].mxu1  ;;  %2855 = vmatprep.subr.bf16.mxu0 %v1067_v46 }
 0x3f8   :  { %v1048_v47 = vpop.f32.mrb[29].mxu1  ;;  %2856 = vmatpush3.bf16.msra.mxu0 %v1067_v46  ;;  %v4098_v56 = vadd.f32 %v2845_v19, %v4095_v52  ;;  %v5016_v19 = vmov 4  }
 0x3f9   :  { %v2846_v48 = vpop.f32.mrb[30].mxu1  ;;  %2857 = vmatprep.subr.bf16.mxu0 %v1068_v8  ;;  %v4087_v49 = vadd.f32 %v1048_v47, %v4080_v36  ;;  %3160 = vset.pattern.permute.xlu1 %v5016_v19  ;;  %v3341_v47 = vld [vmem:[%s4974_s8 + $0x48] sm:$0xff] }
 0x3fa   :  { %v1051_v14 = vpop.f32.mrb[31].mxu1  ;;  %v4090_v29 = vadd.f32 %v2846_v48, %v4084_v27  ;;  %v4150_v48 = vld [vmem:[%s4974_s8 + $0x68] sm:$0xff] }
 0x3fb   :  { %v4093_v7 = vadd.f32 %v1051_v14, %v4073_v40  ;;  %v3343_v14 = vld [vmem:[%s4974_s8 + $0x38] sm:$0xff]  ;;  %v5127_v40 = vmov 4  }
 0x3fc   :  { %2858 = vmatpush3.bf16.msra.mxu0 %v1068_v8  ;;  %v1070_v17 = vpack.c.bf16 %v4090_v29, %v4098_v56  ;;  %v5020_v8 = vmov 5  }
 0x3fd   :  { %v1069_v46 = vpack.c.bf16 %v4093_v7, %v4087_v49  ;;  %3163 = vset.pattern.permute.xlu0 %v5020_v8 }
 0x3ff   :  { %2859 = vmatprep.subr.bf16.mxu0 %v1069_v46 }
 0x400   :  { %2860 = vmatpush3.bf16.msra.mxu0 %v1069_v46  ;;  %v3344_v46 = vld [vmem:[%s4974_s8 + $0x70] sm:$0xff] }
 0x401   :  { %2861 = vmatprep.subr.bf16.mxu0 %v1070_v17 }
 0x404   :  { %2862 = vmatpush3.bf16.msra.mxu0 %v1070_v17  ;;  %v3340_v17 = vld [vmem:[%s4974_s8 + $0x20] sm:$0xff] }
 0x407   :  { %2864 = vmatmul.mubr.bf16.vlgmr.msra.gmra.mrb[32].mxu0 %v3678_v50  ;;  %v3333_v50 = vld [vmem:[%s4974_s8] sm:$0xff] }
 0x408   :  { %2867 = vmatprep.mubr.bf16.mxu0 %v3683_v55  ;;  %1338 = vperm.xlu1 %3160, %v3333_v50   ;;  %v3334_v55 = vld [vmem:[%s4974_s8 + $0x10] sm:$0xff] }
 0x409   :  { %1426 = vperm.xlu0 %3163, %v3334_v55  }
 0x40c   :  { %3161 = vset.pattern.permute.xlu1 %v5020_v8 }
 0x40d   :  { %1418 = vperm.xlu1 %3161, %v3333_v50   ;;  %v3345_v50 = vld [vmem:[%s4974_s8 + $0x40] sm:$0xff] }
 0x40f   :  { %2868 = vmatmul.mubr.bf16.gmra.mrb[36].mxu0 %v3690_v57  ;;  %v3335_v57 = vld [vmem:[%s4974_s8 + $0x30] sm:$0xff] }
 0x410   :  { %2871 = vmatprep.mubr.bf16.mxu0 %v3695_v58  ;;  %1442 = vperm.xlu0 %3163, %v3335_v57   ;;  %v3336_v58 = vld [vmem:[%s4974_s8 + $0x50] sm:$0xff] }
 0x414   :  { %1458 = vperm.xlu0 %3163, %v3336_v58  }
 0x417   :  { %2872 = vmatmul.mubr.bf16.gmra.mrb[40].mxu0 %v3702_v60  ;;  %v3337_v60 = vld [vmem:[%s4974_s8 + $0x8] sm:$0xff] }
 0x418   :  { %2875 = vmatprep.mubr.bf16.mxu0 %v3707_v61  ;;  %1422 = vperm.xlu1 %3161, %v3337_v60   ;;  %v3338_v61 = vld [vmem:[%s4974_s8 + $0x18] sm:$0xff] }
 0x419   :  { %3172 = vset.pattern.permute.xlu0 %v5016_v19 }
 0x41a   :  { %1342 = vperm.xlu0 %3172, %v3337_v60  }
 0x41c   :  { %3162 = vset.pattern.permute.xlu1 %v5016_v19 }
 0x41d   :  { %1350 = vperm.xlu1 %3162, %v3338_v61  }
 0x41e   :  { %1346 = vperm.xlu0 %3172, %v3334_v55  }
 0x41f   :  { %2876 = vmatmul.mubr.bf16.gmra.mrb[44].mxu0 %v3714_v62  ;;  %v3339_v62 = vld [vmem:[%s4974_s8 + $0x28] sm:$0xff] }
 0x421   :  { %3164 = vset.pattern.permute.xlu1 %v5020_v8 }
 0x422   :  { %1430 = vperm.xlu1 %3164, %v3338_v61   ;;  %1358 = vperm.xlu0 %3172, %v3339_v62   ;;  %v3346_v61 = vld [vmem:[%s4974_s8 + $0x58] sm:$0xff] }
 0x426   :  { %3165 = vset.pattern.permute.xlu1 %v5016_v19  ;;  %1362 = vperm.xlu0 %3172, %v3335_v57  }
 0x427   :  { %1354 = vperm.xlu1 %3165, %v3340_v17  }
 0x42a   :  { %1374 = vperm.xlu0 %3172, %v3341_v47  }
 0x42b   :  { %3166 = vset.pattern.permute.xlu1 %v5020_v8 }
 0x42c   :  { %1434 = vperm.xlu1 %3166, %v3340_v17  }
 0x42e   :  { %1378 = vperm.xlu0 %3172, %v3336_v58  }
 0x430   :  { %1438 = vperm.xlu1 %3166, %v3339_v62  }
 0x432   :  { %1390 = vperm.xlu0 %3172, %v4150_v48  }
 0x434   :  { %3167 = vset.pattern.permute.xlu1 %v5016_v19 }
 0x435   :  { %1366 = vperm.xlu1 %3167, %v3343_v14  }
 0x436   :  { %1394 = vperm.xlu0 %3172, %v3344_v46  }
 0x439   :  { %3168 = vset.pattern.permute.xlu1 %v5020_v8 }
 0x43a   :  { %1446 = vperm.xlu1 %3168, %v3343_v14   ;;  %3177 = vset.pattern.permute.xlu0 %v5020_v8 }
 0x43b   :  { %1474 = vperm.xlu0 %3177, %v3344_v46  }
 0x43e   :  { %3169 = vset.pattern.permute.xlu1 %v5016_v19 }
 0x43f   :  { %1370 = vperm.xlu1 %3169, %v3345_v50  }
 0x443   :  { %3170 = vset.pattern.permute.xlu1 %v5020_v8 }
 0x444   :  { %1450 = vperm.xlu1 %3170, %v3345_v50  }
 0x448   :  { %1454 = vperm.xlu1 %3170, %v3341_v47  }
 0x44c   :  { %3171 = vset.pattern.permute.xlu1 %v5016_v19 }
 0x44d   :  { %1382 = vperm.xlu1 %3171, %v3346_v61  }
 0x451   :  { %3173 = vset.pattern.permute.xlu1 %v5020_v8 }
 0x452   :  { %1462 = vperm.xlu1 %3173, %v3346_v61  }
 0x456   :  { %3174 = vset.pattern.permute.xlu1 %v5127_v40 }
 0x488   :  { %v4329_v36 = vpop.permute.xlu0 %1426 }
 0x489   :  { %5132 = vst [vmem:[#allocation67_spill] sm:$0xff] %v4329_v36 }
 0x4da   :  { %v2865_v55 = vpop.f32.mrb[32].mxu0 }
 0x4db   :  { %v1105_v57 = vpop.f32.mrb[33].mxu0  ;;  %v4177_v14 = vsub.f32 %v4034_v51, %v2865_v55 }
 0x4dc   :  { %v4168_v58 = vsub.f32 %v4023_v26, %v1105_v57  ;;  %v2866_v60 = vpop.f32.mrb[34].mxu0 }
 0x4dd   :  { %v4174_v62 = vsub.f32 %v4026_v25, %v2866_v60  ;;  %v1108_v17 = vpop.f32.mrb[35].mxu0  ;;  %v1186_v25 = vmul.f32 %v4177_v14, %v4177_v14 }
 0x4de   :  { %v4180_v47 = vsub.f32 %v4029_v13, %v1108_v17  ;;  %v1184_v26 = vmul.f32 %v4168_v58, %v4168_v58 }
 0x4df   :  { %v1187_v46 = vmul.f32 %v4174_v62, %v4174_v62 }
 0x4e0   :  { %v1185_v50 = vmul.f32 %v4180_v47, %v4180_v47 }
 0x4e1   :  { %v1201_v17 = vpack.c.bf16 %v1187_v46, %v1186_v25 }
 0x4e2   :  { %v2869_v51 = vpop.f32.mrb[36].mxu0  ;;  %v1200_v55 = vpack.c.bf16 %v1185_v50, %v1184_v26  ;;  %v5128_v50 = vmov 5  }
 0x4e3   :  { %v1121_v57 = vpop.f32.mrb[37].mxu0  ;;  %v4199_v61 = vsub.f32 %v4054_v34, %v2869_v51 }
 0x4e4   :  { %v4192_v13 = vsub.f32 %v4045_v63, %v1121_v57  ;;  %v2870_v60 = vpop.f32.mrb[38].mxu0  ;;  %2879 = vmatprep.subr.bf16.mxu1 %v1200_v55  ;;  %v3347_v63 = vld [vmem:[%s4974_s8 + $0x60] sm:$0xff] }
 0x4e5   :  { %v4195_v19 = vsub.f32 %v4048_v24, %v2870_v60  ;;  %v1124_v52 = vpop.f32.mrb[39].mxu0  ;;  %2880 = vmatpush3.bf16.msra.mxu1 %v1200_v55  ;;  %1386 = vperm.xlu1 %3174, %v3347_v63  }
 0x4e6   :  { %v4202_v8 = vsub.f32 %v4051_v2, %v1124_v52  ;;  %2881 = vmatprep.subr.bf16.mxu1 %v1201_v17  ;;  %v1188_v24 = vmul.f32 %v4192_v13, %v4192_v13  ;;  %v1190_v52 = vmul.f32 %v4199_v61, %v4199_v61 }
 0x4e7   :  { %v1191_v26 = vmul.f32 %v4195_v19, %v4195_v19 }
 0x4e8   :  { %v1189_v46 = vmul.f32 %v4202_v8, %v4202_v8 }
 0x4e9   :  { %2882 = vmatpush3.bf16.msra.mxu1 %v1201_v17  ;;  %3175 = vset.pattern.permute.xlu1 %v5128_v50  ;;  %v1203_v57 = vpack.c.bf16 %v1191_v26, %v1190_v52 }
 0x4ea   :  { %v2873_v2 = vpop.f32.mrb[40].mxu0  ;;  %v1202_v34 = vpack.c.bf16 %v1189_v46, %v1188_v24  ;;  %1466 = vperm.xlu1 %3175, %v3347_v63  }
 0x4eb   :  { %v1137_v25 = vpop.f32.mrb[41].mxu0  ;;  %v4223_v17 = vsub.f32 %v4076_v39, %v2873_v2  ;;  %v3348_v2 = vld [vmem:[%s4974_s8 + $0x78] sm:$0xff] }
 0x4ec   :  { %v4217_v51 = vsub.f32 %v4065_v42, %v1137_v25  ;;  %v2874_v55 = vpop.f32.mrb[42].mxu0  ;;  %2883 = vmatprep.subr.bf16.mxu1 %v1202_v34 }
 0x4ed   :  { %v4220_v60 = vsub.f32 %v4068_v30, %v2874_v55  ;;  %v1140_v27 = vpop.f32.mrb[43].mxu0  ;;  %2884 = vmatpush3.bf16.msra.mxu1 %v1202_v34  ;;  %v1194_v39 = vmul.f32 %v4223_v17, %v4223_v17 }
 0x4ee   :  { %v4226_v24 = vsub.f32 %v4071_v43, %v1140_v27  ;;  %2885 = vmatprep.subr.bf16.mxu1 %v1203_v57  ;;  %1470 = vperm.xlu1 %3175, %v4150_v48   ;;  %v1192_v42 = vmul.f32 %v4217_v51, %v4217_v51 }
 0x4ef   :  { %v1195_v63 = vmul.f32 %v4220_v60, %v4220_v60 }
 0x4f0   :  { %v1193_v30 = vmul.f32 %v4226_v24, %v4226_v24 }
 0x4f1   :  { %2886 = vmatpush3.bf16.msra.mxu1 %v1203_v57  ;;  %v1205_v52 = vpack.c.bf16 %v1195_v63, %v1194_v39  ;;  %v4265_v63 = vld [vmem:[%s4975_s6 + $0x8] sm:$0xff]   ;;  %v4283_v39 = vld [vmem:[%s4975_s6 + $0x20] sm:$0xff]  }
 0x4f2   :  { %v2877_v26 = vpop.f32.mrb[44].mxu0  ;;  %v1204_v46 = vpack.c.bf16 %v1193_v30, %v1192_v42  ;;  %3176 = vset.pattern.permute.xlu1 %v5127_v40  ;;  %v4277_v30 = vld [vmem:[%s4975_s6 + $0x18] sm:$0xff]  }
 0x4f3   :  { %v1153_v43 = vpop.f32.mrb[45].mxu0  ;;  %1398 = vperm.xlu1 %3176, %v3348_v2   ;;  %v4248_v55 = vsub.f32 %v4098_v56, %v2877_v26  ;;  %v4289_v26 = vld [vmem:[%s4975_s6 + $0x28] sm:$0xff]  }
 0x4f4   :  { %v4239_v27 = vsub.f32 %v4087_v49, %v1153_v43  ;;  %v2878_v48 = vpop.f32.mrb[46].mxu0  ;;  %2887 = vmatprep.subr.bf16.mxu1 %v1204_v46  ;;  %v4301_v43 = vld [vmem:[%s4975_s6 + $0x38] sm:$0xff]  }
 0x4f5   :  { %v4245_v34 = vsub.f32 %v4090_v29, %v2878_v48  ;;  %v1156_v25 = vpop.f32.mrb[47].mxu0  ;;  %2888 = vmatpush3.bf16.msra.mxu1 %v1204_v46  ;;  %v1198_v56 = vmul.f32 %v4248_v55, %v4248_v55  ;;  %v4295_v46 = vld [vmem:[%s4975_s6 + $0x30] sm:$0xff]   ;;  %v4307_v48 = vld [vmem:[%s4975_s6] sm:$0xff]  }
 0x4f6   :  { %v4251_v40 = vsub.f32 %v4093_v7, %v1156_v25  ;;  %2889 = vmatprep.subr.bf16.mxu1 %v1205_v52  ;;  %v1196_v49 = vmul.f32 %v4239_v27, %v4239_v27 }
 0x4f7   :  { %v1199_v57 = vmul.f32 %v4245_v34, %v4245_v34  ;;  %3178 = vset.pattern.permute.xlu1 %v5128_v50  ;;  %v4271_v50 = vld [vmem:[%s4975_s6 + $0x10] sm:$0xff]  }
 0x4f8   :  { %v1197_v42 = vmul.f32 %v4251_v40, %v4251_v40  ;;  %1478 = vperm.xlu1 %3178, %v3348_v2   ;;  %v4313_v2 = vpop.permute.xlu1 %1338 }
 0x4f9   :  { %2890 = vmatpush3.bf16.msra.mxu1 %v1205_v52  ;;  %v1207_v7 = vpack.c.bf16 %v1199_v57, %v1198_v56  ;;  %v5025_v52 = vmov 0.0  }
 0x4fa   :  { %v1206_v29 = vpack.c.bf16 %v1197_v42, %v1196_v49  ;;  %2911 = vmatprep.subr.bf16.mxu0 %v5025_v52  ;;  %2927 = vmatprep.mubr.msk.bf16.mxu0 %vm3389_vm1, %v5025_v52  ;;  %v4333_v52 = vpop.permute.xlu0 %1442 }
 0x4fc   :  { %2891 = vmatprep.subr.bf16.mxu1 %v1206_v29  ;;  %v4315_v25 = vpop.permute.xlu1 %1418 }
 0x4fd   :  { %2892 = vmatpush3.bf16.msra.mxu1 %v1206_v29  ;;  %5129 = vst [vmem:[#allocation64_spill] sm:$0xff] %v4315_v25 }
 0x4fe   :  { %2893 = vmatprep.subr.bf16.mxu1 %v1207_v7  ;;  %v4337_v31 = vpop.permute.xlu0 %1458 }
 0x500   :  { %v4317_v49 = vpop.permute.xlu1 %1422 }
 0x501   :  { %2894 = vmatpush3.bf16.msra.mxu1 %v1207_v7  ;;  %5130 = vst [vmem:[#allocation65_spill] sm:$0xff] %v4317_v49 }
 0x502   :  { %v4341_v44 = vpop.permute.xlu0 %1342 }
 0x504   :  { %2896 = vmatmul.mubr.bf16.vlgmr.msra.gmra.mrb[32].mxu1 %v4265_v63  ;;  %v4319_v57 = vpop.permute.xlu1 %1350 }
 0x505   :  { %2899 = vmatprep.mubr.bf16.mxu1 %v4271_v50 }
 0x506   :  { %v4345_v15 = vpop.permute.xlu0 %1346 }
 0x508   :  { %v4321_v42 = vpop.permute.xlu1 %1430 }
 0x509   :  { %5131 = vst [vmem:[#allocation66_spill] sm:$0xff] %v4321_v42 }
 0x50a   :  { %v4349_v22 = vpop.permute.xlu0 %1358 }
 0x50c   :  { %2900 = vmatmul.mubr.bf16.gmra.mrb[36].mxu1 %v4277_v30  ;;  %v4323_v56 = vpop.permute.xlu1 %1354 }
 0x50d   :  { %2903 = vmatprep.mubr.bf16.mxu1 %v4283_v39 }
 0x510   :  { %v4325_v29 = vpop.permute.xlu1 %1434 }
 0x514   :  { %2904 = vmatmul.mubr.bf16.gmra.mrb[40].mxu1 %v4289_v26  ;;  %v4327_v7 = vpop.permute.xlu1 %1438 }
 0x515   :  { %2907 = vmatprep.mubr.bf16.mxu1 %v4295_v46 }
 0x518   :  { %v4331_v18 = vpop.permute.xlu1 %1366 }
 0x51c   :  { %2908 = vmatmul.mubr.bf16.gmra.mrb[44].mxu1 %v4301_v43  ;;  %v4335_v41 = vpop.permute.xlu1 %1446 }
 0x51d   :  { %2965 = vmatprep.mubr.bf16.mxu1 %v4307_v48 }
 0x520   :  { %v4339_v20 = vpop.permute.xlu1 %1370 }
 0x524   :  { %v4343_v59 = vpop.permute.xlu1 %1450 }
 0x528   :  { %v4347_v16 = vpop.permute.xlu1 %1454 }
 0x52c   :  { %v4351_v10 = vpop.permute.xlu1 %1382 }
 0x5d7   :  { %v2897_v21 = vpop.f32.mrb[32].mxu1 }
 0x5d8   :  { %v1251_v23 = vadd.f32 1e-05, %v2897_v21  ;;  %v1242_v35 = vpop.f32.mrb[33].mxu1  ;;  %v4353_v21 = vpop.permute.xlu0 %1362 }
 0x5d9   :  { %v1243_v12 = vadd.f32 1e-05, %v1242_v35  ;;  %v2898_v45 = vpop.f32.mrb[34].mxu1 }
 0x5da   :  { %3237 = vrsqrt.f32 %v1251_v23  ;;  %v1254_v37 = vadd.f32 1e-05, %v2898_v45  ;;  %v1245_v11 = vpop.f32.mrb[35].mxu1  ;;  %v4355_v45 = vpop.permute.xlu1 %1462 }
 0x5db   :  { %3239 = vrsqrt.f32 %v1243_v12  ;;  %v1246_v4 = vadd.f32 1e-05, %v1245_v11 }
 0x5dc   :  { %3241 = vrsqrt.f32 %v1254_v37  ;;  %v4360_v33 = vpop.permute.xlu0 %1374 }
 0x5dd   :  { %3243 = vrsqrt.f32 %v1246_v4 }
 0x5df   :  { %v2901_v38 = vpop.f32.mrb[36].mxu1 }
 0x5e0   :  { %v1267_v54 = vadd.f32 1e-05, %v2901_v38  ;;  %v1258_v32 = vpop.f32.mrb[37].mxu1 }
 0x5e1   :  { %v1259_v6 = vadd.f32 1e-05, %v1258_v32  ;;  %v2902_v9 = vpop.f32.mrb[38].mxu1 }
 0x5e2   :  { %3245 = vrsqrt.f32 %v1267_v54  ;;  %v1270_v35 = vadd.f32 1e-05, %v2902_v9  ;;  %v1261_v23 = vpop.f32.mrb[39].mxu1 }
 0x5e3   :  { %3247 = vrsqrt.f32 %v1259_v6  ;;  %v1262_v53 = vadd.f32 1e-05, %v1261_v23 }
 0x5e4   :  { %v3238_v12 = vpop.eup %3237  ;;  %3249 = vrsqrt.f32 %v1270_v35  ;;  %v4364_v35 = vpop.permute.xlu1 %1386 }
 0x5e5   :  { %v3240_v11 = vpop.eup %3239  ;;  %v1323_v37 = vmul.f32 %v3238_v12, %v4177_v14  ;;  %3251 = vrsqrt.f32 %v1262_v53 }
 0x5e6   :  { %v3242_v4 = vpop.eup %3241  ;;  %v1321_v38 = vmul.f32 %v3240_v11, %v4168_v58 }
 0x5e7   :  { %v3244_v0 = vpop.eup %3243  ;;  %v1324_v32 = vmul.f32 %v3242_v4, %v4174_v62  ;;  %v2905_v54 = vpop.f32.mrb[40].mxu1  ;;  %v1403_v9 = vmul.f32 %v4345_v15, %v1323_v37 }
 0x5e8   :  { %v1322_v6 = vmul.f32 %v3244_v0, %v4180_v47  ;;  %v1283_v23 = vadd.f32 1e-05, %v2905_v54  ;;  %v1274_v1 = vpop.f32.mrb[41].mxu1  ;;  %v1401_v14 = vmul.f32 %v4313_v2, %v1321_v38 }
 0x5e9   :  { %v1275_v53 = vadd.f32 1e-05, %v1274_v1  ;;  %v2906_v12 = vpop.f32.mrb[42].mxu1  ;;  %v1404_v58 = vmul.f32 %v4319_v57, %v1324_v32  ;;  %v1483_v11 = vadd.f32 %v4329_v36, %v1403_v9  ;;  %v4374_v36 = vpop.permute.xlu0 %1378 }
 0x5ea   :  { %3253 = vrsqrt.f32 %v1283_v23  ;;  %v1286_v62 = vadd.f32 1e-05, %v2906_v12  ;;  %v1277_v4 = vpop.f32.mrb[43].mxu1  ;;  %v1402_v5 = vmul.f32 %v4341_v44, %v1322_v6  ;;  %v1481_v37 = vadd.f32 %v4315_v25, %v1401_v14 }
 0x5eb   :  { %3255 = vrsqrt.f32 %v1275_v53  ;;  %v1278_v0 = vadd.f32 1e-05, %v1277_v4  ;;  %v1484_v47 = vadd.f32 %v4321_v42, %v1404_v58  ;;  %v1499_v9 = vmax.f32 %v1483_v11, 0.0  ;;  %v4377_v4 = vpop.permute.xlu1 %1466 }
 0x5ec   :  { %v3246_v54 = vpop.eup %3245  ;;  %3257 = vrsqrt.f32 %v1286_v62  ;;  %v1482_v1 = vadd.f32 %v4317_v49, %v1402_v5  ;;  %v1497_v14 = vmax.f32 %v1481_v37, 0.0  ;;  %5133 = vst [vmem:[#allocation68_spill] sm:$0xff] %v4377_v4 }
 0x5ed   :  { %v3248_v38 = vpop.eup %3247  ;;  %v1327_v32 = vmul.f32 %v3246_v54, %v4199_v61  ;;  %3259 = vrsqrt.f32 %v1278_v0  ;;  %v1500_v23 = vmax.f32 %v1484_v47, 0.0 }
 0x5ee   :  { %v3250_v12 = vpop.eup %3249  ;;  %v1325_v6 = vmul.f32 %v3248_v38, %v4192_v13  ;;  %v1498_v53 = vmax.f32 %v1482_v1, 0.0 }
 0x5ef   :  { %v3252_v58 = vpop.eup %3251  ;;  %v1328_v62 = vmul.f32 %v3250_v12, %v4195_v19  ;;  %v2909_v42 = vpop.f32.mrb[44].mxu1  ;;  %v1514_v5 = vpack.c.bf16 %v1500_v23, %v1499_v9  ;;  %v1407_v49 = vmul.f32 %v4353_v21, %v1327_v32 }
 0x5f0   :  { %v1326_v61 = vmul.f32 %v3252_v58, %v4202_v8  ;;  %v1299_v11 = vadd.f32 1e-05, %v2909_v42  ;;  %v1290_v0 = vpop.f32.mrb[45].mxu1  ;;  %v1513_v47 = vpack.c.bf16 %v1498_v53, %v1497_v14  ;;  %v1405_v54 = vmul.f32 %v4323_v56, %v1325_v6  ;;  %v4389_v6 = vpop.permute.xlu0 %1390 }
 0x5f1   :  { %v1291_v25 = vadd.f32 1e-05, %v1290_v0  ;;  %v2910_v13 = vpop.f32.mrb[46].mxu1  ;;  %v1408_v37 = vmul.f32 %v4331_v18, %v1328_v62  ;;  %v1487_v1 = vadd.f32 %v4333_v52, %v1407_v49  ;;  %v5134_v42 = vmov 0.0   ;;  %5135 = vst [vmem:[#allocation69_spill] sm:$0xff] %v4389_v6  ;;  %v4391_v14 = vpop.permute.xlu1 %1470 }
 0x5f2   :  { %3261 = vrsqrt.f32 %v1299_v11  ;;  %v1302_v38 = vadd.f32 1e-05, %v2910_v13  ;;  %v1293_v19 = vpop.f32.mrb[47].mxu1  ;;  %2912 = vmatpush3.bf16.msra.mxu0 %v1513_v47  ;;  %v1406_v9 = vmul.f32 %v4349_v22, %v1326_v61  ;;  %v1485_v32 = vadd.f32 %v4325_v29, %v1405_v54  ;;  %5136 = vst [vmem:[#allocation70_spill] sm:$0xff] %v4391_v14 }
 0x5f3   :  { %3263 = vrsqrt.f32 %v1291_v25  ;;  %v1294_v8 = vadd.f32 1e-05, %v1293_v19  ;;  %2913 = vmatprep.subr.bf16.mxu0 %v5134_v42  ;;  %v1488_v23 = vadd.f32 %v4335_v41, %v1408_v37  ;;  %v1503_v62 = vmax.f32 %v1487_v1, 0.0 }
 0x5f4   :  { %v3254_v12 = vpop.eup %3253  ;;  %3265 = vrsqrt.f32 %v1302_v38  ;;  %v1486_v49 = vadd.f32 %v4327_v7, %v1406_v9  ;;  %v1501_v0 = vmax.f32 %v1485_v32, 0.0 }
 0x5f5   :  { %v3256_v53 = vpop.eup %3255  ;;  %v1331_v58 = vmul.f32 %v3254_v12, %v4223_v17  ;;  %3267 = vrsqrt.f32 %v1294_v8  ;;  %v1504_v61 = vmax.f32 %v1488_v23, 0.0  ;;  %v4405_v32 = vpop.permute.xlu1 %1398 }
 0x5f6   :  { %v3258_v25 = vpop.eup %3257  ;;  %v1329_v11 = vmul.f32 %v3256_v53, %v4217_v51  ;;  %2914 = vmatpush3.bf16.msra.mxu0 %v1514_v5  ;;  %v1502_v47 = vmax.f32 %v1486_v49, 0.0  ;;  %v4403_v5 = vpop.permute.xlu0 %1394 }
 0x5f7   :  { %v3260_v54 = vpop.eup %3259  ;;  %v1332_v13 = vmul.f32 %v3258_v25, %v4220_v60  ;;  %v1411_v37 = vmul.f32 %v4374_v36, %v1331_v58  ;;  %2915 = vmatprep.subr.bf16.mxu0 %v5134_v42  ;;  %v1516_v38 = vpack.c.bf16 %v1504_v61, %v1503_v62 }
 0x5f8   :  { %v1330_v19 = vmul.f32 %v3260_v54, %v4226_v24  ;;  %v1515_v17 = vpack.c.bf16 %v1502_v47, %v1501_v0  ;;  %v1409_v1 = vmul.f32 %v4339_v20, %v1329_v11 }
 0x5f9   :  { %v1412_v9 = vmul.f32 %v4351_v10, %v1332_v13  ;;  %v1491_v51 = vadd.f32 %v4337_v31, %v1411_v37 }
 0x5fa   :  { %2916 = vmatpush3.bf16.msra.mxu0 %v1515_v17  ;;  %v1410_v60 = vmul.f32 %v4360_v33, %v1330_v19  ;;  %v1489_v8 = vadd.f32 %v4343_v59, %v1409_v1  ;;  %v4414_v11 = vpop.permute.xlu0 %1474  ;;  %v4421_v1 = vpop.permute.xlu1 %1478 }
 0x5fb   :  { %v1492_v23 = vadd.f32 %v4355_v45, %v1412_v9  ;;  %2917 = vmatprep.subr.bf16.mxu0 %v5134_v42  ;;  %v1507_v53 = vmax.f32 %v1491_v51, 0.0  ;;  %5137 = vst [vmem:[#allocation71_spill] sm:$0xff] %v4421_v1 }
 0x5fc   :  { %v3262_v24 = vpop.eup %3261  ;;  %v1490_v12 = vadd.f32 %v4347_v16, %v1410_v60  ;;  %v1505_v0 = vmax.f32 %v1489_v8, 0.0 }
 0x5fd   :  { %v3264_v49 = vpop.eup %3263  ;;  %v1508_v58 = vmax.f32 %v1492_v23, 0.0  ;;  %v1335_v62 = vmul.f32 %v3262_v24, %v4248_v55 }
 0x5fe   :  { %v3266_v61 = vpop.eup %3265  ;;  %v1333_v25 = vmul.f32 %v3264_v49, %v4239_v27  ;;  %2918 = vmatpush3.bf16.msra.mxu0 %v1516_v38  ;;  %v1506_v47 = vmax.f32 %v1490_v12, 0.0 }
 0x5ff   :  { %v3268_v54 = vpop.eup %3267  ;;  %v1518_v13 = vpack.c.bf16 %v1508_v58, %v1507_v53  ;;  %v1336_v37 = vmul.f32 %v3266_v61, %v4245_v34  ;;  %v1415_v19 = vmul.f32 %v4403_v5, %v1335_v62  ;;  %2919 = vmatprep.subr.bf16.mxu0 %v5134_v42  ;;  %v3204_v58 = vld [vmem:[%s4977_s1] sm:$0xff]  }
 0x600   :  { %v1413_v17 = vmul.f32 %v4364_v35, %v1333_v25  ;;  %v1334_v55 = vmul.f32 %v3268_v54, %v4251_v40  ;;  %v1517_v27 = vpack.c.bf16 %v1506_v47, %v1505_v0  ;;  %v81_v62 = vld [vmem:[%s4978_s7] sm:$0xf]  ;;  %v3358_v25 = vld [vmem:[%s4973_s4 + $0x8] sm:$0xff]   ;;  %v3359_v0 = vld [vmem:[%s4973_s4 + $0x10] sm:$0xff]  }
 0x601   :  { %v1416_v38 = vmul.f32 %v4405_v32, %v1336_v37  ;;  %v1495_v9 = vadd.f32 %v4414_v11, %v1415_v19  ;;  %v3357_v61 = vld [vmem:[%s4973_s4] sm:$0xff]   ;;  %v3360_v47 = vld [vmem:[%s4973_s4 + $0x18] sm:$0xff]   ;;  %v3363_v37 = vld [vmem:[%s4973_s4 + $0x30] sm:$0xff]  }
 0x602   :  { %v1493_v51 = vadd.f32 %v4377_v4, %v1413_v17  ;;  %v1414_v60 = vmul.f32 %v4389_v6, %v1334_v55  ;;  %2920 = vmatpush3.bf16.msra.mxu0 %v1517_v27  ;;  %v3361_v54 = vld [vmem:[%s4973_s4 + $0x20] sm:$0xff]   ;;  %v3364_v19 = vld [vmem:[%s4973_s4 + $0x38] sm:$0xff]  }
 0x603   :  { %v1496_v34 = vadd.f32 %v4421_v1, %v1416_v38  ;;  %2921 = vmatprep.subr.bf16.mxu0 %v5134_v42  ;;  %v1511_v23 = vmax.f32 %v1495_v9, 0.0 }
 0x604   :  { %v1494_v8 = vadd.f32 %v4391_v14, %v1414_v60  ;;  %v1509_v24 = vmax.f32 %v1493_v51, 0.0 }
 0x605   :  { %v1512_v40 = vmax.f32 %v1496_v34, 0.0 }
 0x606   :  { %v1510_v12 = vmax.f32 %v1494_v8, 0.0  ;;  %2922 = vmatpush3.bf16.msra.mxu0 %v1518_v13  ;;  %v3362_v13 = vld [vmem:[%s4973_s4 + $0x28] sm:$0xff]  }
 0x607   :  { %v1520_v49 = vpack.c.bf16 %v1512_v40, %v1511_v23  ;;  %2923 = vmatprep.subr.bf16.mxu0 %v5134_v42  ;;  %v5139_v23 = vld [vmem:[#allocation3_spill] sm:$0xff] }
 0x608   :  { %v1519_v53 = vpack.c.bf16 %v1510_v12, %v1509_v24  ;;  %v5140_v24 = vld [vmem:[#allocation4_spill] sm:$0xff] }
 0x60a   :  { %2924 = vmatpush3.bf16.msra.mxu0 %v1519_v53 }
 0x60b   :  { %2925 = vmatprep.subr.bf16.mxu0 %v5134_v42 }
 0x60e   :  { %2926 = vmatpush3.bf16.msra.mxu0 %v1520_v49  ;;  %v5141_v49 = vld [vmem:[#allocation2_spill] sm:$0xff] }
 0x60f   :  { %2931 = vmatprep.subr.bf16.mxu0 %v3204_v58 }
 0x611   :  { %2928 = vmatmul.mubr.bf16.vlgmr.msra.gmra.mrb[48].mxu0 %v81_v62 }
 0x612   :  { %2932 = vmatpush3.bf16.msra.mxu0 %v3204_v58  ;;  %2933 = vmatprep.mubr.msk.bf16.mxu0 %vm226_vm0, %v3357_v61 }
 0x619   :  { %2934 = vmatmul.mubr.msk.bf16.vlgmr.msra.gmra.mrb[52].mxu0 %vm226_vm0, %v3358_v25 }
 0x61a   :  { %2937 = vmatprep.mubr.msk.bf16.mxu0 %vm226_vm0, %v3359_v0 }
 0x621   :  { %2938 = vmatmul.mubr.msk.bf16.gmra.mrb[56].mxu0 %vm226_vm0, %v3360_v47  ;;  %v5142_v47 = vld [vmem:[#allocation6_spill] sm:$0xff] }
 0x622   :  { %2941 = vmatprep.mubr.msk.bf16.mxu0 %vm226_vm0, %v3361_v54 }
 0x629   :  { %2942 = vmatmul.mubr.msk.bf16.gmra.mrb[60].mxu0 %vm226_vm0, %v3362_v13  ;;  %v5143_v13 = vld [vmem:[#allocation7_spill] sm:$0xff] }
 0x62a   :  { %2945 = vmatprep.mubr.msk.bf16.mxu0 %vm226_vm0, %v3363_v37 }
 0x631   :  { %2946 = vmatmul.mubr.msk.bf16.gmra.mrb[64].mxu0 %vm226_vm0, %v3364_v19  ;;  %v5144_v19 = vld [vmem:[#allocation5_spill] sm:$0xff] }
 0x632   :  { %2997 = vmatprep.mubr.bf16.mxu0 %v4307_v48 }
 0x6e4   :  { %v4471_v17 = vpop.f32.mrb[48].mxu0 }
 0x6e5   :  { %5138 = vst [vmem:[#allocation72_spill] sm:$0xff] %v4471_v17  ;;  %v2929_v55 = vpop.f32.mrb[49].mxu0 }
 0x6e6   :  { %v1558_v27 = vpop.f32.mrb[50].mxu0 }
 0x6e7   :  { %v2930_v38 = vpop.f32.mrb[51].mxu0  ;;  %v5145_v27 = vld [vmem:[#allocation8_spill] sm:$0xff] }
 0x6ec   :  { %v2935_v9 = vpop.f32.mrb[52].mxu0 }
 0x6ed   :  { %v1603_v51 = vpop.f32.mrb[53].mxu0  ;;  %v4483_v53 = vadd.f32 %v2935_v9, %v5141_v49  ;;  %v5146_v49 = vld [vmem:[#allocation10_spill] sm:$0xff] }
 0x6ee   :  { %v2936_v60 = vpop.f32.mrb[54].mxu0  ;;  %v4474_v8 = vadd.f32 %v1603_v51, %v3581_v28 }
 0x6ef   :  { %v1606_v34 = vpop.f32.mrb[55].mxu0  ;;  %v4477_v40 = vadd.f32 %v2936_v60, %v5139_v23 }
 0x6f0   :  { %v4480_v12 = vadd.f32 %v1606_v34, %v5140_v24 }
 0x6f1   :  { %v1667_v62 = vpack.c.bf16 %v4477_v40, %v4483_v53 }
 0x6f2   :  { %v1666_v58 = vpack.c.bf16 %v4480_v12, %v4474_v8 }
 0x6f4   :  { %v2939_v61 = vpop.f32.mrb[56].mxu0  ;;  %2949 = vmatprep.subr.bf16.mxu1 %v1666_v58 }
 0x6f5   :  { %v1619_v25 = vpop.f32.mrb[57].mxu0  ;;  %2950 = vmatpush3.bf16.msra.mxu1 %v1666_v58  ;;  %v4499_v38 = vadd.f32 %v2939_v61, %v5145_v27  ;;  %v5148_v61 = vld [vmem:[#allocation9_spill] sm:$0xff] }
 0x6f6   :  { %v2940_v28 = vpop.f32.mrb[58].mxu0  ;;  %2951 = vmatprep.subr.bf16.mxu1 %v1667_v62  ;;  %v4490_v54 = vadd.f32 %v1619_v25, %v5142_v47 }
 0x6f7   :  { %v1622_v0 = vpop.f32.mrb[59].mxu0  ;;  %v4493_v37 = vadd.f32 %v2940_v28, %v5143_v13 }
 0x6f8   :  { %v4496_v55 = vadd.f32 %v1622_v0, %v5144_v19  ;;  %v5149_v0 = vld [vmem:[#allocation12_spill] sm:$0xff] }
 0x6f9   :  { %2952 = vmatpush3.bf16.msra.mxu1 %v1667_v62  ;;  %v1669_v51 = vpack.c.bf16 %v4493_v37, %v4499_v38  ;;  %v5147_v62 = vld [vmem:[#allocation11_spill] sm:$0xff] }
 0x6fa   :  { %v1668_v9 = vpack.c.bf16 %v4496_v55, %v4490_v54 }
 0x6fc   :  { %v2943_v60 = vpop.f32.mrb[60].mxu0  ;;  %2953 = vmatprep.subr.bf16.mxu1 %v1668_v9 }
 0x6fd   :  { %v1635_v34 = vpop.f32.mrb[61].mxu0  ;;  %2954 = vmatpush3.bf16.msra.mxu1 %v1668_v9  ;;  %v4515_v47 = vadd.f32 %v2943_v60, %v5149_v0  ;;  %v5152_v60 = vld [vmem:[#allocation13_spill] sm:$0xff]  ;;  %v5153_v0 = vld [vmem:[#allocation16_spill] sm:$0xff] }
 0x6fe   :  { %v2944_v23 = vpop.f32.mrb[62].mxu0  ;;  %2955 = vmatprep.subr.bf16.mxu1 %v1669_v51  ;;  %v4506_v58 = vadd.f32 %v1635_v34, %v5146_v49  ;;  %v5150_v49 = vld [vmem:[#allocation14_spill] sm:$0xff] }
 0x6ff   :  { %v1638_v24 = vpop.f32.mrb[63].mxu0  ;;  %v4509_v25 = vadd.f32 %v2944_v23, %v5147_v62 }
 0x700   :  { %v4512_v28 = vadd.f32 %v1638_v24, %v5148_v61 }
 0x701   :  { %2956 = vmatpush3.bf16.msra.mxu1 %v1669_v51  ;;  %v1671_v19 = vpack.c.bf16 %v4509_v25, %v4515_v47  ;;  %v5151_v51 = vld [vmem:[#allocation15_spill] sm:$0xff] }
 0x702   :  { %v1670_v13 = vpack.c.bf16 %v4512_v28, %v4506_v58 }
 0x704   :  { %v2947_v27 = vpop.f32.mrb[64].mxu0  ;;  %2957 = vmatprep.subr.bf16.mxu1 %v1670_v13 }
 0x705   :  { %v1651_v9 = vpop.f32.mrb[65].mxu0  ;;  %2958 = vmatpush3.bf16.msra.mxu1 %v1670_v13  ;;  %v4531_v17 = vadd.f32 %v2947_v27, %v5153_v0 }
 0x706   :  { %v2948_v34 = vpop.f32.mrb[66].mxu0  ;;  %2959 = vmatprep.subr.bf16.mxu1 %v1671_v19  ;;  %v4522_v24 = vadd.f32 %v1651_v9, %v5150_v49 }
 0x707   :  { %v1654_v23 = vpop.f32.mrb[67].mxu0  ;;  %v4525_v62 = vadd.f32 %v2948_v34, %v5151_v51 }
 0x708   :  { %v4528_v61 = vadd.f32 %v1654_v23, %v5152_v60 }
 0x709   :  { %2960 = vmatpush3.bf16.msra.mxu1 %v1671_v19  ;;  %v1673_v13 = vpack.c.bf16 %v4525_v62, %v4531_v17 }
 0x70a   :  { %v1672_v14 = vpack.c.bf16 %v4528_v61, %v4522_v24 }
 0x70c   :  { %2961 = vmatprep.subr.bf16.mxu1 %v1672_v14 }
 0x70d   :  { %2962 = vmatpush3.bf16.msra.mxu1 %v1672_v14  ;;  %v3365_v14 = vld [vmem:[%s4976_s5] sm:$0xff]  }
 0x70e   :  { %2963 = vmatprep.subr.bf16.mxu1 %v1673_v13 }
 0x711   :  { %2964 = vmatpush3.bf16.msra.mxu1 %v1673_v13 }
 0x714   :  { %2966 = vmatmul.mubr.bf16.vlgmr.msra.gmra.mrb[48].mxu1 %v4265_v63 }
 0x715   :  { %2969 = vmatprep.mubr.bf16.mxu1 %v4271_v50 }
 0x71c   :  { %2970 = vmatmul.mubr.bf16.gmra.mrb[52].mxu1 %v4277_v30 }
 0x71d   :  { %2973 = vmatprep.mubr.bf16.mxu1 %v4283_v39 }
 0x724   :  { %2974 = vmatmul.mubr.bf16.gmra.mrb[56].mxu1 %v4289_v26 }
 0x725   :  { %2977 = vmatprep.mubr.bf16.mxu1 %v4295_v46 }
 0x72c   :  { %2978 = vmatmul.mubr.bf16.gmra.mrb[60].mxu1 %v4301_v43 }
 0x72d   :  { %3029 = vmatprep.mubr.bf16.mxu1 %v3365_v14 }
 0x7e7   :  { %v2967_v19 = vpop.f32.mrb[48].mxu1 }
 0x7e8   :  { %v1708_v27 = vpop.f32.mrb[49].mxu1  ;;  %v4554_v51 = vsub.f32 %v4483_v53, %v2967_v19 }
 0x7e9   :  { %v4548_v9 = vsub.f32 %v4474_v8, %v1708_v27  ;;  %v2968_v34 = vpop.f32.mrb[50].mxu1 }
 0x7ea   :  { %v4551_v23 = vsub.f32 %v4477_v40, %v2968_v34  ;;  %v1711_v49 = vpop.f32.mrb[51].mxu1  ;;  %v1789_v40 = vmul.f32 %v4554_v51, %v4554_v51 }
 0x7eb   :  { %v4557_v60 = vsub.f32 %v4480_v12, %v1711_v49  ;;  %v1787_v0 = vmul.f32 %v4548_v9, %v4548_v9 }
 0x7ec   :  { %v1790_v13 = vmul.f32 %v4551_v23, %v4551_v23 }
 0x7ed   :  { %v1788_v8 = vmul.f32 %v4557_v60, %v4557_v60 }
 0x7ee   :  { %v1804_v19 = vpack.c.bf16 %v1790_v13, %v1789_v40 }
 0x7ef   :  { %v2971_v14 = vpop.f32.mrb[52].mxu1  ;;  %v1803_v27 = vpack.c.bf16 %v1788_v8, %v1787_v0 }
 0x7f0   :  { %v1724_v34 = vpop.f32.mrb[53].mxu1  ;;  %v4574_v4 = vsub.f32 %v4499_v38, %v2971_v14 }
 0x7f1   :  { %v4568_v53 = vsub.f32 %v4490_v54, %v1724_v34  ;;  %v2972_v12 = vpop.f32.mrb[54].mxu1  ;;  %2981 = vmatprep.subr.bf16.mxu0 %v1803_v27 }
 0x7f2   :  { %v4571_v49 = vsub.f32 %v4493_v37, %v2972_v12  ;;  %v1727_v1 = vpop.f32.mrb[55].mxu1  ;;  %2982 = vmatpush3.bf16.msra.mxu0 %v1803_v27  ;;  %v1793_v37 = vmul.f32 %v4574_v4, %v4574_v4 }
 0x7f3   :  { %v4577_v6 = vsub.f32 %v4496_v55, %v1727_v1  ;;  %2983 = vmatprep.subr.bf16.mxu0 %v1804_v19  ;;  %v1791_v0 = vmul.f32 %v4568_v53, %v4568_v53 }
 0x7f4   :  { %v1794_v54 = vmul.f32 %v4571_v49, %v4571_v49 }
 0x7f5   :  { %v1792_v13 = vmul.f32 %v4577_v6, %v4577_v6 }
 0x7f6   :  { %2984 = vmatpush3.bf16.msra.mxu0 %v1804_v19  ;;  %v1806_v14 = vpack.c.bf16 %v1794_v54, %v1793_v37 }
 0x7f7   :  { %v2975_v8 = vpop.f32.mrb[56].mxu1  ;;  %v1805_v38 = vpack.c.bf16 %v1792_v13, %v1791_v0 }
 0x7f8   :  { %v1740_v40 = vpop.f32.mrb[57].mxu1  ;;  %v4594_v12 = vsub.f32 %v4515_v47, %v2975_v8 }
 0x7f9   :  { %v4588_v1 = vsub.f32 %v4506_v58, %v1740_v40  ;;  %v2976_v55 = vpop.f32.mrb[58].mxu1  ;;  %2985 = vmatprep.subr.bf16.mxu0 %v1805_v38 }
 0x7fa   :  { %v4591_v27 = vsub.f32 %v4509_v25, %v2976_v55  ;;  %v1743_v34 = vpop.f32.mrb[59].mxu1  ;;  %2986 = vmatpush3.bf16.msra.mxu0 %v1805_v38  ;;  %v1797_v25 = vmul.f32 %v4594_v12, %v4594_v12 }
 0x7fb   :  { %v4597_v19 = vsub.f32 %v4512_v28, %v1743_v34  ;;  %2987 = vmatprep.subr.bf16.mxu0 %v1806_v14  ;;  %v1795_v0 = vmul.f32 %v4588_v1, %v4588_v1 }
 0x7fc   :  { %v1798_v58 = vmul.f32 %v4591_v27, %v4591_v27 }
 0x7fd   :  { %v1796_v54 = vmul.f32 %v4597_v19, %v4597_v19 }
 0x7fe   :  { %2988 = vmatpush3.bf16.msra.mxu0 %v1806_v14  ;;  %v1808_v38 = vpack.c.bf16 %v1798_v58, %v1797_v25 }
 0x7ff   :  { %v2979_v13 = vpop.f32.mrb[60].mxu1  ;;  %v1807_v47 = vpack.c.bf16 %v1796_v54, %v1795_v0 }
 0x800   :  { %v1756_v37 = vpop.f32.mrb[61].mxu1  ;;  %v4614_v34 = vsub.f32 %v4531_v17, %v2979_v13 }
 0x801   :  { %v4608_v28 = vsub.f32 %v4522_v24, %v1756_v37  ;;  %v2980_v8 = vpop.f32.mrb[62].mxu1  ;;  %2989 = vmatprep.subr.bf16.mxu0 %v1807_v47 }
 0x802   :  { %v4611_v40 = vsub.f32 %v4525_v62, %v2980_v8  ;;  %v1759_v55 = vpop.f32.mrb[63].mxu1  ;;  %2990 = vmatpush3.bf16.msra.mxu0 %v1807_v47  ;;  %v1801_v62 = vmul.f32 %v4614_v34, %v4614_v34 }
 0x803   :  { %v4617_v14 = vsub.f32 %v4528_v61, %v1759_v55  ;;  %2991 = vmatprep.subr.bf16.mxu0 %v1808_v38  ;;  %v1799_v0 = vmul.f32 %v4608_v28, %v4608_v28 }
 0x804   :  { %v1802_v24 = vmul.f32 %v4611_v40, %v4611_v40 }
 0x805   :  { %v1800_v58 = vmul.f32 %v4617_v14, %v4617_v14 }
 0x806   :  { %2992 = vmatpush3.bf16.msra.mxu0 %v1808_v38  ;;  %v1810_v17 = vpack.c.bf16 %v1802_v24, %v1801_v62 }
 0x807   :  { %v1809_v54 = vpack.c.bf16 %v1800_v58, %v1799_v0 }
 0x809   :  { %2993 = vmatprep.subr.bf16.mxu0 %v1809_v54 }
 0x80a   :  { %2994 = vmatpush3.bf16.msra.mxu0 %v1809_v54 }
 0x80b   :  { %2995 = vmatprep.subr.bf16.mxu0 %v1810_v17 }
 0x80e   :  { %2996 = vmatpush3.bf16.msra.mxu0 %v1810_v17 }
 0x811   :  { %2998 = vmatmul.mubr.bf16.vlgmr.msra.gmra.mrb[68].mxu0 %v4265_v63 }
 0x812   :  { %3001 = vmatprep.mubr.bf16.mxu0 %v4271_v50 }
 0x819   :  { %3002 = vmatmul.mubr.bf16.gmra.mrb[72].mxu0 %v4277_v30 }
 0x81a   :  { %3005 = vmatprep.mubr.bf16.mxu0 %v4283_v39 }
 0x821   :  { %3006 = vmatmul.mubr.bf16.gmra.mrb[76].mxu0 %v4289_v26 }
 0x822   :  { %3009 = vmatprep.mubr.bf16.mxu0 %v4295_v46 }
 0x829   :  { %3010 = vmatmul.mubr.bf16.gmra.mrb[80].mxu0 %v4301_v43 }
 0x82a   :  { %3061 = vmatprep.mubr.bf16.mxu0 %v4307_v48 }
 0x8e4   :  { %v2999_v61 = vpop.f32.mrb[68].mxu0 }
 0x8e5   :  { %v1854_v25 = vadd.f32 1e-05, %v2999_v61  ;;  %v1845_v13 = vpop.f32.mrb[69].mxu0 }
 0x8e6   :  { %v1846_v47 = vadd.f32 1e-05, %v1845_v13  ;;  %v3000_v37 = vpop.f32.mrb[70].mxu0 }
 0x8e7   :  { %3269 = vrsqrt.f32 %v1854_v25  ;;  %v1857_v63 = vadd.f32 1e-05, %v3000_v37  ;;  %v1848_v50 = vpop.f32.mrb[71].mxu0 }
 0x8e8   :  { %3271 = vrsqrt.f32 %v1846_v47  ;;  %v1849_v30 = vadd.f32 1e-05, %v1848_v50  ;;  %v5154_v50 = vld [vmem:[#allocation24_spill] sm:$0xff] }
 0x8e9   :  { %3273 = vrsqrt.f32 %v1857_v63 }
 0x8ea   :  { %3275 = vrsqrt.f32 %v1849_v30 }
 0x8ec   :  { %v3003_v39 = vpop.f32.mrb[72].mxu0 }
 0x8ed   :  { %v1870_v26 = vadd.f32 1e-05, %v3003_v39  ;;  %v1861_v8 = vpop.f32.mrb[73].mxu0 }
 0x8ee   :  { %v1862_v46 = vadd.f32 1e-05, %v1861_v8  ;;  %v3004_v38 = vpop.f32.mrb[74].mxu0  ;;  %v5155_v8 = vld [vmem:[#allocation19_spill] sm:$0xff] }
 0x8ef   :  { %3277 = vrsqrt.f32 %v1870_v26  ;;  %v1873_v43 = vadd.f32 1e-05, %v3004_v38  ;;  %v1864_v48 = vpop.f32.mrb[75].mxu0 }
 0x8f0   :  { %3279 = vrsqrt.f32 %v1862_v46  ;;  %v1865_v55 = vadd.f32 1e-05, %v1864_v48  ;;  %v5157_v48 = vld [vmem:[#allocation17_spill] sm:$0xff] }
 0x8f1   :  { %v3270_v0 = vpop.eup %3269  ;;  %3281 = vrsqrt.f32 %v1873_v43 }
 0x8f2   :  { %v3272_v24 = vpop.eup %3271  ;;  %3283 = vrsqrt.f32 %v1865_v55  ;;  %v1926_v58 = vmul.f32 %v3270_v0, %v4554_v51  ;;  %v5156_v51 = vld [vmem:[#allocation34_spill] sm:$0xff] }
 0x8f3   :  { %v3274_v62 = vpop.eup %3273  ;;  %v1924_v54 = vmul.f32 %v3272_v24, %v4548_v9  ;;  %v5159_v24 = vld [vmem:[#allocation20_spill] sm:$0xff] }
 0x8f4   :  { %v3276_v17 = vpop.eup %3275  ;;  %v3007_v61 = vpop.f32.mrb[76].mxu0  ;;  %v1927_v25 = vmul.f32 %v3274_v62, %v4551_v23  ;;  %v1942_v13 = vmul.f32 %v1926_v58, %v3862_v3  ;;  %v5158_v23 = vld [vmem:[#allocation18_spill] sm:$0xff]  ;;  %v5160_v62 = vld [vmem:[#allocation32_spill] sm:$0xff] }
 0x8f5   :  { %v1886_v47 = vadd.f32 1e-05, %v3007_v61  ;;  %v1877_v37 = vpop.f32.mrb[77].mxu0  ;;  %v1925_v63 = vmul.f32 %v3276_v17, %v4557_v60  ;;  %v1940_v30 = vmul.f32 %v1924_v54, %v5154_v50 }
 0x8f6   :  { %v1878_v39 = vadd.f32 1e-05, %v1877_v37  ;;  %v3008_v26 = vpop.f32.mrb[78].mxu0  ;;  %v1943_v46 = vmul.f32 %v1927_v25, %v5155_v8  ;;  %v1958_v38 = vadd.f32 %v1942_v13, %v5156_v51 }
 0x8f7   :  { %3285 = vrsqrt.f32 %v1886_v47  ;;  %v1889_v9 = vadd.f32 1e-05, %v3008_v26  ;;  %v1880_v43 = vpop.f32.mrb[79].mxu0  ;;  %v1941_v55 = vmul.f32 %v1925_v63, %v5157_v48  ;;  %v1956_v0 = vadd.f32 %v1940_v30, %v5158_v23 }
 0x8f8   :  { %3287 = vrsqrt.f32 %v1878_v39  ;;  %v1881_v3 = vadd.f32 1e-05, %v1880_v43  ;;  %v1959_v58 = vadd.f32 %v1943_v46, %v5159_v24  ;;  %v1974_v61 = vmax.f32 %v1958_v38, 0.0  ;;  %v5161_v46 = vld [vmem:[#allocation23_spill] sm:$0xff] }
 0x8f9   :  { %v3278_v60 = vpop.eup %3277  ;;  %3289 = vrsqrt.f32 %v1889_v9  ;;  %v1957_v54 = vadd.f32 %v1941_v55, %v5160_v62  ;;  %v1972_v37 = vmax.f32 %v1956_v0, 0.0  ;;  %v5162_v55 = vld [vmem:[#allocation26_spill] sm:$0xff]  ;;  %v5163_v0 = vld [vmem:[#allocation25_spill] sm:$0xff] }
 0x8fa   :  { %v3280_v17 = vpop.eup %3279  ;;  %3291 = vrsqrt.f32 %v1881_v3  ;;  %v1975_v25 = vmax.f32 %v1959_v58, 0.0  ;;  %v1930_v13 = vmul.f32 %v3278_v60, %v4574_v4  ;;  %v5164_v58 = vld [vmem:[#allocation38_spill] sm:$0xff] }
 0x8fb   :  { %v3282_v47 = vpop.eup %3281  ;;  %v1973_v50 = vmax.f32 %v1957_v54, 0.0  ;;  %v1928_v63 = vmul.f32 %v3280_v17, %v4568_v53  ;;  %v5166_v17 = vld [vmem:[#allocation22_spill] sm:$0xff] }
 0x8fc   :  { %v3284_v30 = vpop.eup %3283  ;;  %v3011_v39 = vpop.f32.mrb[80].mxu0  ;;  %v1989_v26 = vpack.c.bf16 %v1975_v25, %v1974_v61  ;;  %v1931_v8 = vmul.f32 %v3282_v47, %v4571_v49  ;;  %v1946_v51 = vmul.f32 %v1930_v13, %v5161_v46  ;;  %v5165_v49 = vld [vmem:[#allocation21_spill] sm:$0xff] }
 0x8fd   :  { %v1902_v9 = vadd.f32 1e-05, %v3011_v39  ;;  %v1893_v43 = vpop.f32.mrb[81].mxu0  ;;  %v1988_v48 = vpack.c.bf16 %v1973_v50, %v1972_v37  ;;  %v1929_v38 = vmul.f32 %v3284_v30, %v4577_v6  ;;  %v1944_v23 = vmul.f32 %v1928_v63, %v5162_v55  ;;  %v5167_v6 = vld [vmem:[#allocation27_spill] sm:$0xff]  ;;  %v5168_v37 = vld [vmem:[#allocation36_spill] sm:$0xff] }
 0x8fe   :  { %v1894_v4 = vadd.f32 1e-05, %v1893_v43  ;;  %v3012_v3 = vpop.f32.mrb[82].mxu0  ;;  %v1947_v24 = vmul.f32 %v1931_v8, %v5163_v0  ;;  %v1962_v53 = vadd.f32 %v1946_v51, %v5164_v58 }
 0x8ff   :  { %3293 = vrsqrt.f32 %v1902_v9  ;;  %v1905_v60 = vadd.f32 1e-05, %v3012_v3  ;;  %v1896_v62 = vpop.f32.mrb[83].mxu0  ;;  %3013 = vmatprep.subr.bf16.mxu1 %v1988_v48  ;;  %v1945_v54 = vmul.f32 %v1929_v38, %v5165_v49  ;;  %v1960_v61 = vadd.f32 %v1944_v23, %v5166_v17  ;;  %v5169_v23 = vld [vmem:[#allocation33_spill] sm:$0xff] }
 0x900   :  { %3295 = vrsqrt.f32 %v1894_v4  ;;  %v1897_v25 = vadd.f32 1e-05, %v1896_v62  ;;  %3014 = vmatpush3.bf16.msra.mxu1 %v1988_v48  ;;  %v1963_v13 = vadd.f32 %v1947_v24, %v5167_v6  ;;  %v1978_v30 = vmax.f32 %v1962_v53, 0.0  ;;  %v5170_v24 = vld [vmem:[#allocation28_spill] sm:$0xff]  ;;  %v5171_v53 = vld [vmem:[#allocation35_spill] sm:$0xff]  ;;  %v5173_v49 = vld [vmem:[#allocation29_spill] sm:$0xff] }
 0x901   :  { %v3286_v47 = vpop.eup %3285  ;;  %3297 = vrsqrt.f32 %v1905_v60  ;;  %3015 = vmatprep.subr.bf16.mxu1 %v1989_v26  ;;  %v1961_v50 = vadd.f32 %v1945_v54, %v5168_v37  ;;  %v1976_v51 = vmax.f32 %v1960_v61, 0.0 }
 0x902   :  { %v3288_v63 = vpop.eup %3287  ;;  %3299 = vrsqrt.f32 %v1897_v25  ;;  %v1979_v39 = vmax.f32 %v1963_v13, 0.0  ;;  %v1934_v8 = vmul.f32 %v3286_v47, %v4594_v12  ;;  %v5172_v12 = vld [vmem:[#allocation42_spill] sm:$0xff]  ;;  %v5176_v25 = vld [vmem:[#allocation40_spill] sm:$0xff] }
 0x903   :  { %v3290_v46 = vpop.eup %3289  ;;  %v1977_v9 = vmax.f32 %v1961_v50, 0.0  ;;  %v1932_v43 = vmul.f32 %v3288_v63, %v4588_v1  ;;  %v5174_v1 = vld [vmem:[#allocation31_spill] sm:$0xff] }
 0x904   :  { %v3292_v38 = vpop.eup %3291  ;;  %3016 = vmatpush3.bf16.msra.mxu1 %v1989_v26  ;;  %v1991_v48 = vpack.c.bf16 %v1979_v39, %v1978_v30  ;;  %v1935_v55 = vmul.f32 %v3290_v46, %v4591_v27  ;;  %v1950_v4 = vmul.f32 %v1934_v8, %v5169_v23  ;;  %v5175_v26 = vld [vmem:[#allocation37_spill] sm:$0xff]  ;;  %v5178_v23 = vld [vmem:[#allocation30_spill] sm:$0xff] }
 0x905   :  { %v1990_v3 = vpack.c.bf16 %v1977_v9, %v1976_v51  ;;  %v1933_v0 = vmul.f32 %v3292_v38, %v4597_v19  ;;  %v1948_v58 = vmul.f32 %v1932_v43, %v5170_v24  ;;  %v5177_v9 = vld [vmem:[#allocation43_spill] sm:$0xff] }
 0x906   :  { %v1951_v60 = vmul.f32 %v1935_v55, %v5171_v53  ;;  %v1966_v62 = vadd.f32 %v1950_v4, %v5172_v12 }
 0x907   :  { %3017 = vmatprep.subr.bf16.mxu1 %v1990_v3  ;;  %v1949_v54 = vmul.f32 %v1933_v0, %v5173_v49  ;;  %v1964_v17 = vadd.f32 %v1948_v58, %v5174_v1  ;;  %v5181_v58 = vld [vmem:[#allocation39_spill] sm:$0xff] }
 0x908   :  { %3018 = vmatpush3.bf16.msra.mxu1 %v1990_v3  ;;  %v1967_v61 = vadd.f32 %v1951_v60, %v5175_v26  ;;  %v1982_v19 = vmax.f32 %v1966_v62, 0.0  ;;  %v5179_v3 = vld [vmem:[#allocation45_spill] sm:$0xff] }
 0x909   :  { %v3294_v27 = vpop.eup %3293  ;;  %3019 = vmatprep.subr.bf16.mxu1 %v1991_v48  ;;  %v1965_v6 = vadd.f32 %v1949_v54, %v5176_v25  ;;  %v1980_v63 = vmax.f32 %v1964_v17, 0.0  ;;  %v3368_v25 = vld [vmem:[%s4976_s5 + $0x18] sm:$0xff]  }
 0x90a   :  { %v3296_v13 = vpop.eup %3295  ;;  %v1983_v47 = vmax.f32 %v1967_v61, 0.0  ;;  %v1938_v37 = vmul.f32 %v3294_v27, %v4614_v34  ;;  %v5180_v34 = vld [vmem:[#allocation46_spill] sm:$0xff]  ;;  %v3366_v61 = vld [vmem:[%s4976_s5 + $0x8] sm:$0xff]   ;;  %v3367_v27 = vld [vmem:[%s4976_s5 + $0x10] sm:$0xff]  }
 0x90b   :  { %v3298_v50 = vpop.eup %3297  ;;  %v1981_v30 = vmax.f32 %v1965_v6, 0.0  ;;  %v1936_v39 = vmul.f32 %v3296_v13, %v4608_v28  ;;  %v5182_v28 = vld [vmem:[#allocation41_spill] sm:$0xff]  ;;  %v3369_v6 = vld [vmem:[%s4976_s5 + $0x20] sm:$0xff]   ;;  %v3370_v13 = vld [vmem:[%s4976_s5 + $0x28] sm:$0xff]  }
 0x90c   :  { %v3300_v8 = vpop.eup %3299  ;;  %3020 = vmatpush3.bf16.msra.mxu1 %v1991_v48  ;;  %v1993_v46 = vpack.c.bf16 %v1983_v47, %v1982_v19  ;;  %v1939_v51 = vmul.f32 %v3298_v50, %v4611_v40  ;;  %v1954_v43 = vmul.f32 %v1938_v37, %v5177_v9  ;;  %v5183_v48 = vld [vmem:[#allocation47_spill] sm:$0xff]  ;;  %v5184_v40 = vld [vmem:[#allocation44_spill] sm:$0xff]  ;;  %v3372_v47 = vld [vmem:[%s4976_s5 + $0x38] sm:$0xff]  }
 0x90d   :  { %v1992_v38 = vpack.c.bf16 %v1981_v30, %v1980_v63  ;;  %v1937_v55 = vmul.f32 %v3300_v8, %v4617_v14  ;;  %v1952_v4 = vmul.f32 %v1936_v39, %v5178_v23  ;;  %v3371_v19 = vld [vmem:[%s4976_s5 + $0x30] sm:$0xff]   ;;  %v3373_v37 = vld [vmem:[%s4975_s6] sm:$0xff]  }
 0x90e   :  { %v1955_v0 = vmul.f32 %v1939_v51, %v5179_v3  ;;  %v1970_v24 = vadd.f32 %v1954_v43, %v5180_v34  ;;  %v5185_v8 = vld [vmem:[#allocation48_spill] sm:$0xff]  ;;  %v5186_v51 = vld [vmem:[#allocation50_spill] sm:$0xff]  ;;  %v5187_v43 = vld [vmem:[#allocation49_spill] sm:$0xff] }
 0x90f   :  { %3021 = vmatprep.subr.bf16.mxu1 %v1992_v38  ;;  %v1953_v53 = vmul.f32 %v1937_v55, %v5181_v58  ;;  %v1968_v60 = vadd.f32 %v1952_v4, %v5182_v28  ;;  %v5188_v55 = vld [vmem:[#allocation51_spill] sm:$0xff] }
 0x910   :  { %3022 = vmatpush3.bf16.msra.mxu1 %v1992_v38  ;;  %v1971_v12 = vadd.f32 %v1955_v0, %v5183_v48  ;;  %v1986_v49 = vmax.f32 %v1970_v24, 0.0 }
 0x911   :  { %3023 = vmatprep.subr.bf16.mxu1 %v1993_v46  ;;  %v1969_v62 = vadd.f32 %v1953_v53, %v5184_v40  ;;  %v1984_v14 = vmax.f32 %v1968_v60, 0.0  ;;  %v5189_v53 = vld [vmem:[#allocation53_spill] sm:$0xff]  ;;  %v5190_v60 = vld [vmem:[#allocation54_spill] sm:$0xff] }
 0x912   :  { %v1987_v54 = vmax.f32 %v1971_v12, 0.0  ;;  %v5191_v12 = vld [vmem:[#allocation52_spill] sm:$0xff] }
 0x913   :  { %v1985_v1 = vmax.f32 %v1969_v62, 0.0  ;;  %v5192_v62 = vld [vmem:[#allocation55_spill] sm:$0xff] }
 0x914   :  { %3024 = vmatpush3.bf16.msra.mxu1 %v1993_v46  ;;  %v1995_v17 = vpack.c.bf16 %v1987_v54, %v1986_v49 }
 0x915   :  { %v1994_v26 = vpack.c.bf16 %v1985_v1, %v1984_v14 }
 0x917   :  { %3025 = vmatprep.subr.bf16.mxu1 %v1994_v26 }
 0x918   :  { %3026 = vmatpush3.bf16.msra.mxu1 %v1994_v26 }
 0x919   :  { %3027 = vmatprep.subr.bf16.mxu1 %v1995_v17 }
 0x91c   :  { %3028 = vmatpush3.bf16.msra.mxu1 %v1995_v17 }
 0x91f   :  { %3030 = vmatmul.mubr.bf16.vlgmr.msra.gmra.mrb[64].mxu1 %v3366_v61 }
 0x920   :  { %3033 = vmatprep.mubr.bf16.mxu1 %v3367_v27  ;;  %v5193_v27 = vld [vmem:[#allocation57_spill] sm:$0xff] }
 0x927   :  { %3034 = vmatmul.mubr.bf16.gmra.mrb[68].mxu1 %v3368_v25 }
 0x928   :  { %3037 = vmatprep.mubr.bf16.mxu1 %v3369_v6  ;;  %v5194_v6 = vld [vmem:[#allocation58_spill] sm:$0xff] }
 0x92f   :  { %3038 = vmatmul.mubr.bf16.gmra.mrb[72].mxu1 %v3370_v13 }
 0x930   :  { %3041 = vmatprep.mubr.bf16.mxu1 %v3371_v19  ;;  %v5195_v19 = vld [vmem:[#allocation56_spill] sm:$0xff] }
 0x937   :  { %3042 = vmatmul.mubr.bf16.gmra.mrb[76].mxu1 %v3372_v47 }
 0x938   :  { %3093 = vmatprep.mubr.bf16.mxu1 %v3373_v37  ;;  %v5196_v37 = vld [vmem:[#allocation59_spill] sm:$0xff] }
 0x9f2   :  { %v3031_v50 = vpop.f32.mrb[64].mxu1 }
 0x9f3   :  { %v2030_v63 = vpop.f32.mrb[65].mxu1  ;;  %v4717_v23 = vadd.f32 %v3031_v50, %v5188_v55  ;;  %v5197_v55 = vld [vmem:[#allocation61_spill] sm:$0xff] }
 0x9f4   :  { %v3032_v30 = vpop.f32.mrb[66].mxu1  ;;  %v4708_v46 = vadd.f32 %v2030_v63, %v5185_v8 }
 0x9f5   :  { %v2033_v39 = vpop.f32.mrb[67].mxu1  ;;  %v4711_v9 = vadd.f32 %v3032_v30, %v5186_v51 }
 0x9f6   :  { %v4714_v38 = vadd.f32 %v2033_v39, %v5187_v43 }
 0x9f7   :  { %v2094_v3 = vpack.c.bf16 %v4711_v9, %v4717_v23 }
 0x9f8   :  { %v2093_v4 = vpack.c.bf16 %v4714_v38, %v4708_v46 }
 0x9fa   :  { %v3035_v0 = vpop.f32.mrb[68].mxu1  ;;  %3045 = vmatprep.subr.bf16.mxu0 %v2093_v4 }
 0x9fb   :  { %v2046_v34 = vpop.f32.mrb[69].mxu1  ;;  %3046 = vmatpush3.bf16.msra.mxu0 %v2093_v4  ;;  %v4733_v49 = vadd.f32 %v3035_v0, %v5192_v62  ;;  %v4775_v62 = vld [vmem:[%s4975_s6 + $0x8] sm:$0xff]  }
 0x9fc   :  { %v3036_v24 = vpop.f32.mrb[70].mxu1  ;;  %3047 = vmatprep.subr.bf16.mxu0 %v2094_v3  ;;  %v4724_v28 = vadd.f32 %v2046_v34, %v5189_v53  ;;  %v5199_v34 = vld [vmem:[#allocation60_spill] sm:$0xff] }
 0x9fd   :  { %v2049_v58 = vpop.f32.mrb[71].mxu1  ;;  %v4727_v48 = vadd.f32 %v3036_v24, %v5190_v60 }
 0x9fe   :  { %v4730_v40 = vadd.f32 %v2049_v58, %v5191_v12  ;;  %v5200_v58 = vld [vmem:[#allocation63_spill] sm:$0xff] }
 0x9ff   :  { %3048 = vmatpush3.bf16.msra.mxu0 %v2094_v3  ;;  %v2096_v14 = vpack.c.bf16 %v4727_v48, %v4733_v49  ;;  %v5198_v3 = vld [vmem:[#allocation62_spill] sm:$0xff] }
 0xa00   :  { %v2095_v54 = vpack.c.bf16 %v4730_v40, %v4724_v28 }
 0xa02   :  { %v3039_v1 = vpop.f32.mrb[72].mxu1  ;;  %3049 = vmatprep.subr.bf16.mxu0 %v2095_v54 }
 0xa03   :  { %v2062_v17 = vpop.f32.mrb[73].mxu1  ;;  %3050 = vmatpush3.bf16.msra.mxu0 %v2095_v54  ;;  %v4749_v50 = vadd.f32 %v3039_v1, %v5196_v37  ;;  %v4781_v54 = vld [vmem:[%s4975_s6 + $0x10] sm:$0xff]   ;;  %v4793_v1 = vld [vmem:[%s4975_s6 + $0x20] sm:$0xff]  }
 0xa04   :  { %v3040_v26 = vpop.f32.mrb[74].mxu1  ;;  %3051 = vmatprep.subr.bf16.mxu0 %v2096_v14  ;;  %v4740_v25 = vadd.f32 %v2062_v17, %v5193_v27  ;;  %v4799_v17 = vld [vmem:[%s4975_s6 + $0x28] sm:$0xff]  }
 0xa05   :  { %v2065_v61 = vpop.f32.mrb[75].mxu1  ;;  %v4743_v13 = vadd.f32 %v3040_v26, %v5194_v6  ;;  %v4805_v26 = vld [vmem:[%s4975_s6 + $0x30] sm:$0xff]  }
 0xa06   :  { %v4746_v47 = vadd.f32 %v2065_v61, %v5195_v19  ;;  %v4811_v61 = vld [vmem:[%s4975_s6 + $0x38] sm:$0xff]  }
 0xa07   :  { %3052 = vmatpush3.bf16.msra.mxu0 %v2096_v14  ;;  %v2098_v30 = vpack.c.bf16 %v4743_v13, %v4749_v50  ;;  %v4787_v14 = vld [vmem:[%s4975_s6 + $0x18] sm:$0xff]  }
 0xa08   :  { %v2097_v63 = vpack.c.bf16 %v4746_v47, %v4740_v25 }
 0xa0a   :  { %v3043_v39 = vpop.f32.mrb[76].mxu1  ;;  %3053 = vmatprep.subr.bf16.mxu0 %v2097_v63 }
 0xa0b   :  { %v2078_v8 = vpop.f32.mrb[77].mxu1  ;;  %3054 = vmatpush3.bf16.msra.mxu0 %v2097_v63  ;;  %v4765_v53 = vadd.f32 %v3043_v39, %v5200_v58 }
 0xa0c   :  { %v3044_v51 = vpop.f32.mrb[78].mxu1  ;;  %3055 = vmatprep.subr.bf16.mxu0 %v2098_v30  ;;  %v4756_v4 = vadd.f32 %v2078_v8, %v5197_v55 }
 0xa0d   :  { %v2081_v43 = vpop.f32.mrb[79].mxu1  ;;  %v4759_v0 = vadd.f32 %v3044_v51, %v5198_v3 }
 0xa0e   :  { %v4762_v24 = vadd.f32 %v2081_v43, %v5199_v34 }
 0xa0f   :  { %3056 = vmatpush3.bf16.msra.mxu0 %v2098_v30  ;;  %v2100_v12 = vpack.c.bf16 %v4759_v0, %v4765_v53 }
 0xa10   :  { %v2099_v60 = vpack.c.bf16 %v4762_v24, %v4756_v4 }
 0xa12   :  { %3057 = vmatprep.subr.bf16.mxu0 %v2099_v60 }
 0xa13   :  { %3058 = vmatpush3.bf16.msra.mxu0 %v2099_v60 }
 0xa14   :  { %3059 = vmatprep.subr.bf16.mxu0 %v2100_v12 }
 0xa17   :  { %3060 = vmatpush3.bf16.msra.mxu0 %v2100_v12 }
 0xa18   :  { %3109 = vmatprep.subr.bf16.mxu0 %v5134_v42 }
 0xa1a   :  { %3062 = vmatmul.mubr.bf16.vlgmr.msra.gmra.mrb[84].mxu0 %v4775_v62 }
 0xa1b   :  { %3065 = vmatprep.mubr.bf16.mxu0 %v4781_v54 }
 0xa22   :  { %3066 = vmatmul.mubr.bf16.gmra.mrb[88].mxu0 %v4787_v14 }
 0xa23   :  { %3069 = vmatprep.mubr.bf16.mxu0 %v4793_v1 }
 0xa2a   :  { %3070 = vmatmul.mubr.bf16.gmra.mrb[92].mxu0 %v4799_v17 }
 0xa2b   :  { %3073 = vmatprep.mubr.bf16.mxu0 %v4805_v26 }
 0xa32   :  { %3074 = vmatmul.mubr.bf16.gmra.mrb[96].mxu0 %v4811_v61 }
 0xa33   :  { %3125 = vmatprep.mubr.msk.bf16.mxu0 %vm3389_vm1, %v5134_v42 }
 0xaed   :  { %v3063_v27 = vpop.f32.mrb[84].mxu0 }
 0xaee   :  { %v2135_v6 = vpop.f32.mrb[85].mxu0  ;;  %v4823_v39 = vsub.f32 %v4717_v23, %v3063_v27 }
 0xaef   :  { %v4817_v19 = vsub.f32 %v4708_v46, %v2135_v6  ;;  %v3064_v37 = vpop.f32.mrb[86].mxu0 }
 0xaf0   :  { %v4820_v63 = vsub.f32 %v4711_v9, %v3064_v37  ;;  %v2138_v30 = vpop.f32.mrb[87].mxu0  ;;  %v2216_v9 = vmul.f32 %v4823_v39, %v4823_v39 }
 0xaf1   :  { %v4826_v8 = vsub.f32 %v4714_v38, %v2138_v30  ;;  %v2214_v51 = vmul.f32 %v4817_v19, %v4817_v19 }
 0xaf2   :  { %v2217_v43 = vmul.f32 %v4820_v63, %v4820_v63 }
 0xaf3   :  { %v2215_v46 = vmul.f32 %v4826_v8, %v4826_v8 }
 0xaf4   :  { %v2231_v58 = vpack.c.bf16 %v2217_v43, %v2216_v9 }
 0xaf5   :  { %v3067_v55 = vpop.f32.mrb[88].mxu0  ;;  %v2230_v3 = vpack.c.bf16 %v2215_v46, %v2214_v51 }
 0xaf6   :  { %v2151_v34 = vpop.f32.mrb[89].mxu0  ;;  %v4843_v27 = vsub.f32 %v4733_v49, %v3067_v55 }
 0xaf7   :  { %v4837_v23 = vsub.f32 %v4724_v28, %v2151_v34  ;;  %v3068_v38 = vpop.f32.mrb[90].mxu0  ;;  %3077 = vmatprep.subr.bf16.mxu1 %v2230_v3 }
 0xaf8   :  { %v4840_v60 = vsub.f32 %v4727_v48, %v3068_v38  ;;  %v2154_v12 = vpop.f32.mrb[91].mxu0  ;;  %3078 = vmatpush3.bf16.msra.mxu1 %v2230_v3  ;;  %v2220_v48 = vmul.f32 %v4843_v27, %v4843_v27 }
 0xaf9   :  { %v4846_v6 = vsub.f32 %v4730_v40, %v2154_v12  ;;  %3079 = vmatprep.subr.bf16.mxu1 %v2231_v58  ;;  %v2218_v37 = vmul.f32 %v4837_v23, %v4837_v23 }
 0xafa   :  { %v2221_v28 = vmul.f32 %v4840_v60, %v4840_v60 }
 0xafb   :  { %v2219_v30 = vmul.f32 %v4846_v6, %v4846_v6 }
 0xafc   :  { %3080 = vmatpush3.bf16.msra.mxu1 %v2231_v58  ;;  %v2233_v9 = vpack.c.bf16 %v2221_v28, %v2220_v48 }
 0xafd   :  { %v3071_v51 = vpop.f32.mrb[92].mxu0  ;;  %v2232_v49 = vpack.c.bf16 %v2219_v30, %v2218_v37 }
 0xafe   :  { %v2167_v43 = vpop.f32.mrb[93].mxu0  ;;  %v4863_v34 = vsub.f32 %v4749_v50, %v3071_v51 }
 0xaff   :  { %v4857_v40 = vsub.f32 %v4740_v25, %v2167_v43  ;;  %v3072_v46 = vpop.f32.mrb[94].mxu0  ;;  %3081 = vmatprep.subr.bf16.mxu1 %v2232_v49 }
 0xb00   :  { %v4860_v55 = vsub.f32 %v4743_v13, %v3072_v46  ;;  %v2170_v3 = vpop.f32.mrb[95].mxu0  ;;  %3082 = vmatpush3.bf16.msra.mxu1 %v2232_v49  ;;  %v2224_v13 = vmul.f32 %v4863_v34, %v4863_v34 }
 0xb01   :  { %v4866_v38 = vsub.f32 %v4746_v47, %v2170_v3  ;;  %3083 = vmatprep.subr.bf16.mxu1 %v2233_v9  ;;  %v2222_v58 = vmul.f32 %v4857_v40, %v4857_v40 }
 0xb02   :  { %v2225_v25 = vmul.f32 %v4860_v55, %v4860_v55 }
 0xb03   :  { %v2223_v12 = vmul.f32 %v4866_v38, %v4866_v38 }
 0xb04   :  { %3084 = vmatpush3.bf16.msra.mxu1 %v2233_v9  ;;  %v2235_v48 = vpack.c.bf16 %v2225_v25, %v2224_v13 }
 0xb05   :  { %v3075_v37 = vpop.f32.mrb[96].mxu0  ;;  %v2234_v50 = vpack.c.bf16 %v2223_v12, %v2222_v58 }
 0xb06   :  { %v2183_v28 = vpop.f32.mrb[97].mxu0  ;;  %v4883_v43 = vsub.f32 %v4765_v53, %v3075_v37 }
 0xb07   :  { %v4877_v47 = vsub.f32 %v4756_v4, %v2183_v28  ;;  %v3076_v30 = vpop.f32.mrb[98].mxu0  ;;  %3085 = vmatprep.subr.bf16.mxu1 %v2234_v50 }
 0xb08   :  { %v4880_v51 = vsub.f32 %v4759_v0, %v3076_v30  ;;  %v2186_v49 = vpop.f32.mrb[99].mxu0  ;;  %3086 = vmatpush3.bf16.msra.mxu1 %v2234_v50  ;;  %v2228_v0 = vmul.f32 %v4883_v43, %v4883_v43 }
 0xb09   :  { %v4886_v46 = vsub.f32 %v4762_v24, %v2186_v49  ;;  %3087 = vmatprep.subr.bf16.mxu1 %v2235_v48  ;;  %v2226_v9 = vmul.f32 %v4877_v47, %v4877_v47 }
 0xb0a   :  { %v2229_v4 = vmul.f32 %v4880_v51, %v4880_v51 }
 0xb0b   :  { %v2227_v3 = vmul.f32 %v4886_v46, %v4886_v46 }
 0xb0c   :  { %3088 = vmatpush3.bf16.msra.mxu1 %v2235_v48  ;;  %v2237_v53 = vpack.c.bf16 %v2229_v4, %v2228_v0 }
 0xb0d   :  { %v2236_v58 = vpack.c.bf16 %v2227_v3, %v2226_v9 }
 0xb0f   :  { %3089 = vmatprep.subr.bf16.mxu1 %v2236_v58 }
 0xb10   :  { %3090 = vmatpush3.bf16.msra.mxu1 %v2236_v58 }
 0xb11   :  { %3091 = vmatprep.subr.bf16.mxu1 %v2237_v53 }
 0xb14   :  { %3092 = vmatpush3.bf16.msra.mxu1 %v2237_v53 }
 0xb17   :  { %3094 = vmatmul.mubr.bf16.vlgmr.msra.gmra.mrb[80].mxu1 %v4775_v62 }
 0xb18   :  { %3097 = vmatprep.mubr.bf16.mxu1 %v4781_v54 }
 0xb1f   :  { %3098 = vmatmul.mubr.bf16.gmra.mrb[84].mxu1 %v4787_v14 }
 0xb20   :  { %3101 = vmatprep.mubr.bf16.mxu1 %v4793_v1 }
 0xb27   :  { %3102 = vmatmul.mubr.bf16.gmra.mrb[88].mxu1 %v4799_v17 }
 0xb28   :  { %3105 = vmatprep.mubr.bf16.mxu1 %v4805_v26 }
 0xb2f   :  { %3106 = vmatmul.mubr.bf16.gmra.mrb[92].mxu1 %v4811_v61 }
 0xbea   :  { %v3095_v24 = vpop.f32.mrb[80].mxu1 }
 0xbeb   :  { %v2281_v25 = vadd.f32 1e-05, %v3095_v24  ;;  %v2272_v12 = vpop.f32.mrb[81].mxu1 }
 0xbec   :  { %v2273_v13 = vadd.f32 1e-05, %v2272_v12  ;;  %v3096_v37 = vpop.f32.mrb[82].mxu1 }
 0xbed   :  { %3301 = vrsqrt.f32 %v2281_v25  ;;  %v2284_v50 = vadd.f32 1e-05, %v3096_v37  ;;  %v2275_v62 = vpop.f32.mrb[83].mxu1 }
 0xbee   :  { %3303 = vrsqrt.f32 %v2273_v13  ;;  %v2276_v54 = vadd.f32 1e-05, %v2275_v62 }
 0xbef   :  { %3305 = vrsqrt.f32 %v2284_v50 }
 0xbf0   :  { %3307 = vrsqrt.f32 %v2276_v54 }
 0xbf2   :  { %v3099_v14 = vpop.f32.mrb[84].mxu1 }
 0xbf3   :  { %v2297_v1 = vadd.f32 1e-05, %v3099_v14  ;;  %v2288_v28 = vpop.f32.mrb[85].mxu1  ;;  %v5201_v14 = vld [vmem:[#allocation67_spill] sm:$0xff] }
 0xbf4   :  { %v2289_v17 = vadd.f32 1e-05, %v2288_v28  ;;  %v3100_v30 = vpop.f32.mrb[86].mxu1 }
 0xbf5   :  { %3309 = vrsqrt.f32 %v2297_v1  ;;  %v2300_v26 = vadd.f32 1e-05, %v3100_v30  ;;  %v2291_v61 = vpop.f32.mrb[87].mxu1 }
 0xbf6   :  { %3311 = vrsqrt.f32 %v2289_v17  ;;  %v2292_v48 = vadd.f32 1e-05, %v2291_v61  ;;  %v5202_v17 = vld [vmem:[#allocation64_spill] sm:$0xff] }
 0xbf7   :  { %v3302_v49 = vpop.eup %3301  ;;  %3313 = vrsqrt.f32 %v2300_v26 }
 0xbf8   :  { %v3304_v9 = vpop.eup %3303  ;;  %v2353_v4 = vmul.f32 %v3302_v49, %v4823_v39  ;;  %3315 = vrsqrt.f32 %v2292_v48 }
 0xbf9   :  { %v3306_v3 = vpop.eup %3305  ;;  %v2351_v0 = vmul.f32 %v3304_v9, %v4817_v19 }
 0xbfa   :  { %v3308_v58 = vpop.eup %3307  ;;  %v2354_v53 = vmul.f32 %v3306_v3, %v4820_v63  ;;  %v3103_v24 = vpop.f32.mrb[88].mxu1  ;;  %v2369_v25 = vmul.f32 %v2353_v4, %v4345_v15 }
 0xbfb   :  { %v2352_v12 = vmul.f32 %v3308_v58, %v4826_v8  ;;  %v2313_v13 = vadd.f32 1e-05, %v3103_v24  ;;  %v2304_v37 = vpop.f32.mrb[89].mxu1  ;;  %v2367_v50 = vmul.f32 %v2351_v0, %v4313_v2  ;;  %v5203_v8 = vld [vmem:[#allocation66_spill] sm:$0xff]  ;;  %v5204_v2 = vld [vmem:[#allocation65_spill] sm:$0xff] }
 0xbfc   :  { %v2305_v62 = vadd.f32 1e-05, %v2304_v37  ;;  %v3104_v54 = vpop.f32.mrb[90].mxu1  ;;  %v2370_v39 = vmul.f32 %v2354_v53, %v4319_v57  ;;  %v2385_v1 = vadd.f32 %v2369_v25, %v5201_v14 }
 0xbfd   :  { %3317 = vrsqrt.f32 %v2313_v13  ;;  %v2316_v19 = vadd.f32 1e-05, %v3104_v54  ;;  %v2307_v28 = vpop.f32.mrb[91].mxu1  ;;  %v2368_v63 = vmul.f32 %v2352_v12, %v4341_v44  ;;  %v2383_v30 = vadd.f32 %v2367_v50, %v5202_v17 }
 0xbfe   :  { %3319 = vrsqrt.f32 %v2305_v62  ;;  %v2308_v15 = vadd.f32 1e-05, %v2307_v28  ;;  %v2386_v26 = vadd.f32 %v2370_v39, %v5203_v8  ;;  %v2401_v9 = vmax.f32 %v2385_v1, 0.0 }
 0xbff   :  { %v3310_v61 = vpop.eup %3309  ;;  %3321 = vrsqrt.f32 %v2316_v19  ;;  %v2384_v48 = vadd.f32 %v2368_v63, %v5204_v2  ;;  %v2399_v44 = vmax.f32 %v2383_v30, 0.0 }
 0xc00   :  { %v3312_v49 = vpop.eup %3311  ;;  %v2357_v57 = vmul.f32 %v3310_v61, %v4843_v27  ;;  %3323 = vrsqrt.f32 %v2308_v15  ;;  %v2402_v4 = vmax.f32 %v2386_v26, 0.0 }
 0xc01   :  { %v3314_v3 = vpop.eup %3313  ;;  %v2355_v0 = vmul.f32 %v3312_v49, %v4837_v23  ;;  %v2400_v58 = vmax.f32 %v2384_v48, 0.0 }
 0xc02   :  { %v3316_v53 = vpop.eup %3315  ;;  %v2358_v24 = vmul.f32 %v3314_v3, %v4840_v60  ;;  %v3107_v25 = vpop.f32.mrb[92].mxu1  ;;  %v2416_v12 = vpack.c.bf16 %v2402_v4, %v2401_v9  ;;  %v2373_v13 = vmul.f32 %v2357_v57, %v4353_v21 }
 0xc03   :  { %v2356_v37 = vmul.f32 %v3316_v53, %v4846_v6  ;;  %v2329_v50 = vadd.f32 1e-05, %v3107_v25  ;;  %v2320_v62 = vpop.f32.mrb[93].mxu1  ;;  %v2415_v27 = vpack.c.bf16 %v2400_v58, %v2399_v44  ;;  %v2371_v54 = vmul.f32 %v2355_v0, %v4323_v56 }
 0xc04   :  { %v2321_v39 = vadd.f32 1e-05, %v2320_v62  ;;  %v3108_v14 = vpop.f32.mrb[94].mxu1  ;;  %v2374_v23 = vmul.f32 %v2358_v24, %v4331_v18  ;;  %v2389_v1 = vadd.f32 %v2373_v13, %v4333_v52  ;;  %v5205_v13 = vld [vmem:[#allocation69_spill] sm:$0xff] }
 0xc05   :  { %3325 = vrsqrt.f32 %v2329_v50  ;;  %v2332_v19 = vadd.f32 1e-05, %v3108_v14  ;;  %v2323_v60 = vpop.f32.mrb[95].mxu1  ;;  %3110 = vmatpush3.bf16.msra.mxu0 %v2415_v27  ;;  %v2372_v28 = vmul.f32 %v2356_v37, %v4349_v22  ;;  %v2387_v21 = vadd.f32 %v2371_v54, %v4325_v29  ;;  %v5206_v50 = vld [vmem:[#allocation68_spill] sm:$0xff]  ;;  %v5208_v54 = vld [vmem:[#allocation70_spill] sm:$0xff] }
 0xc06   :  { %3327 = vrsqrt.f32 %v2321_v39  ;;  %v2324_v6 = vadd.f32 1e-05, %v2323_v60  ;;  %3111 = vmatprep.subr.bf16.mxu0 %v5134_v42  ;;  %v2390_v56 = vadd.f32 %v2374_v23, %v4335_v41  ;;  %v2405_v30 = vmax.f32 %v2389_v1, 0.0  ;;  %v3381_v23 = vld [vmem:[%s4978_s7] sm:$0xf] }
 0xc07   :  { %v3318_v63 = vpop.eup %3317  ;;  %3329 = vrsqrt.f32 %v2332_v19  ;;  %v2388_v18 = vadd.f32 %v2372_v28, %v4327_v7  ;;  %v2403_v29 = vmax.f32 %v2387_v21, 0.0  ;;  %v3390_v1 = vmov 1966171168  }
 0xc08   :  { %v3320_v17 = vpop.eup %3319  ;;  %v2361_v52 = vmul.f32 %v3318_v63, %v4863_v34  ;;  %3331 = vrsqrt.f32 %v2324_v6  ;;  %v2406_v15 = vmax.f32 %v2390_v56, 0.0  ;;  %v2467_v19 = vunpack.c.l.s4 %v3390_v1  ;;  %v2463_v63 = vld [vmem:[%s4979_s2] sm:$0x1] }
 0xc09   :  { %v3322_v8 = vpop.eup %3321  ;;  %v2359_v22 = vmul.f32 %v3320_v17, %v4857_v40  ;;  %3112 = vmatpush3.bf16.msra.mxu0 %v2416_v12  ;;  %v2404_v26 = vmax.f32 %v2388_v18, 0.0  ;;  %v2469_v60 = vlaneseq }
 0xc0a   :  { %v3324_v61 = vpop.eup %3323  ;;  %v2362_v2 = vmul.f32 %v3322_v8, %v4860_v55  ;;  %3113 = vmatprep.subr.bf16.mxu0 %v5134_v42  ;;  %v2418_v41 = vpack.c.bf16 %v2406_v15, %v2405_v30  ;;  %v2377_v7 = vmul.f32 %v2361_v52, %v4374_v36  ;;  %v2468_v28 = vunpack.c.0.s8 %v2467_v19 }
 0xc0b   :  { %v2360_v48 = vmul.f32 %v3324_v61, %v4866_v38  ;;  %v2417_v34 = vpack.c.bf16 %v2404_v26, %v2403_v29  ;;  %v2375_v49 = vmul.f32 %v2359_v22, %v4339_v20  ;;  %v2470_v21 = vshrl.u32 %v2469_v60, 7  ;;  %v5209_v29 = vld [vmem:[#allocation72_spill] sm:$0xff] }
 0xc0c   :  { %v2378_v57 = vmul.f32 %v2362_v2, %v4351_v10  ;;  %v2393_v40 = vadd.f32 %v2377_v7, %v4337_v31  ;;  %v2464_v52 = vsub.f32 1.0, %v2463_v63  ;;  %v2485_v26 = vrot.slane %v5209_v29, 1  ;;  %v2488_v2 = vld [vmem:[%s4980_s3] sm:$0x1] }
 0xc0d   :  { %3114 = vmatpush3.bf16.msra.mxu0 %v2417_v34  ;;  %v2376_v9 = vmul.f32 %v2360_v48, %v4360_v33  ;;  %v2391_v4 = vadd.f32 %v2375_v49, %v4343_v59  ;;  %v2471_v6 = vsub.s32 %v2468_v28, %v2470_v21 }
 0xc0e   :  { %3115 = vmatprep.subr.bf16.mxu0 %v5134_v42  ;;  %v2394_v55 = vadd.f32 %v2378_v57, %v4355_v45  ;;  %v2409_v20 = vmax.f32 %v2393_v40, 0.0 }
 0xc0f   :  { %v3326_v3 = vpop.eup %3325  ;;  %v2392_v36 = vadd.f32 %v2376_v9, %v4347_v16  ;;  %v2407_v58 = vmax.f32 %v2391_v4, 0.0 }
 0xc10   :  { %v3328_v38 = vpop.eup %3327  ;;  %v2365_v0 = vmul.f32 %v3326_v3, %v4883_v43  ;;  %v2410_v44 = vmax.f32 %v2394_v55, 0.0 }
 0xc11   :  { %v3330_v10 = vpop.eup %3329  ;;  %v2363_v31 = vmul.f32 %v3328_v38, %v4877_v47  ;;  %3116 = vmatpush3.bf16.msra.mxu0 %v2418_v41  ;;  %v2408_v33 = vmax.f32 %v2392_v36, 0.0 }
 0xc12   :  { %v3332_v53 = vpop.eup %3331  ;;  %v2366_v59 = vmul.f32 %v3330_v10, %v4880_v51  ;;  %3117 = vmatprep.subr.bf16.mxu0 %v5134_v42  ;;  %v2420_v45 = vpack.c.bf16 %v2410_v44, %v2409_v20  ;;  %v2381_v24 = vmul.f32 %v2365_v0, %v4403_v5  ;;  %v5207_v51 = vld [vmem:[#allocation71_spill] sm:$0xff] }
 0xc13   :  { %v2364_v16 = vmul.f32 %v3332_v53, %v4886_v46  ;;  %v2419_v25 = vpack.c.bf16 %v2408_v33, %v2407_v58  ;;  %v2379_v43 = vmul.f32 %v2363_v31, %v4364_v35 }
 0xc14   :  { %v2382_v12 = vmul.f32 %v2366_v59, %v4405_v32  ;;  %v2397_v47 = vadd.f32 %v2381_v24, %v4414_v11 }
 0xc15   :  { %3118 = vmatpush3.bf16.msra.mxu0 %v2419_v25  ;;  %v2380_v37 = vmul.f32 %v2364_v16, %v5205_v13  ;;  %v2395_v62 = vadd.f32 %v2379_v43, %v5206_v50 }
 0xc16   :  { %3119 = vmatprep.subr.bf16.mxu0 %v5134_v42  ;;  %v2398_v27 = vadd.f32 %v2382_v12, %v5207_v51  ;;  %v2413_v39 = vmax.f32 %v2397_v47, 0.0 }
 0xc17   :  { %v2396_v5 = vadd.f32 %v2380_v37, %v5208_v54  ;;  %v2411_v14 = vmax.f32 %v2395_v62, 0.0 }
 0xc18   :  { %v2414_v46 = vmax.f32 %v2398_v27, 0.0 }
 0xc19   :  { %3120 = vmatpush3.bf16.msra.mxu0 %v2420_v45  ;;  %v2412_v35 = vmax.f32 %v2396_v5, 0.0 }
 0xc1a   :  { %3121 = vmatprep.subr.bf16.mxu0 %v5134_v42  ;;  %v2422_v32 = vpack.c.bf16 %v2414_v46, %v2413_v39 }
 0xc1b   :  { %v2421_v11 = vpack.c.bf16 %v2412_v35, %v2411_v14 }
 0xc1d   :  { %3122 = vmatpush3.bf16.msra.mxu0 %v2421_v11 }
 0xc1e   :  { %3123 = vmatprep.subr.bf16.mxu0 %v5134_v42 }
 0xc21   :  { %3124 = vmatpush3.bf16.msra.mxu0 %v2422_v32 }
 0xc24   :  { %3126 = vmatmul.mubr.bf16.vlgmr.msra.gmra.mrb[100].mxu0 %v3381_v23 }
 0xcf7   :  { %v2457_v56 = vpop.f32.mrb[100].mxu0 }
 0xcf8   :  { %v2472_v18 = vrot.slane %v2457_v56, %v2471_v6  ;;  %v3127_v17 = vpop.f32.mrb[101].mxu0 }
 0xcf9   :  { %v2460_v42 = vpop.f32.mrb[102].mxu0 }
 0xcfa   :  { %v2473_v30 = vcombine.high %v2472_v18, %v2472_v18  ;;  %v3128_v15 = vpop.f32.mrb[103].mxu0 }
 0xcfc   :  { %v2480_v8 = vrot.slane %v2473_v30, %v2471_v6 }
 0xcfe   :  { %v2482_v22 = vmul.f32 %v2480_v8, %v2464_v52 }
 0xd00   :  { %v2483_v61 = vadd.f32 %v2482_v22, %v5209_v29 }
 0xd02   :  { %v2487_v41 = vsub.f32 %v2483_v61, %v2485_v26 }
 0xd04   :  { %v2489_v7 = vsub.f32 %v2487_v41, %v2488_v2 }
 0xd06   :  { %2490 = vst [vmem:[%s4981_s9] sm:$0x1] %v2489_v7 }

</bundles_post_ra>
